<compile_context>
chip_gen: v5e
topology: v5e:2x2
jax: 0.10.0
libtpu: 0.0.40
codegen_flags: <defaults>
</compile_context>

<pallas_src>
import jax
import jax.numpy as jnp
import numpy as np
from jax.experimental import pallas as pl
from jax.experimental.pallas import tpu as pltpu

IN_FEATURES = 96 * 96      # 9216
HIDDEN = 100
OUT = 30

HIDDEN_PAD = 128           # lane-aligned hidden width
OUT_PAD = 128              # lane-aligned output width
TK = 4608                  # contraction tile for the first Linear (9216 / 4608 = 2 steps)


def _fcnet_kernel(x_ref, w1_ref, b1_ref, w2_ref, b2_ref, o_ref, acc_ref):
    k = pl.program_id(0)

    @pl.when(k == 0)
    def _():
        acc_ref[...] = jnp.zeros_like(acc_ref)

    # Partial product of the first Linear over this K tile (bf16 in, f32 acc).
    acc_ref[...] += jnp.dot(
        x_ref[...], w1_ref[...], preferred_element_type=jnp.float32
    )

    @pl.when(k == pl.num_programs(0) - 1)
    def _():
        # bias + ReLU of layer 1, then fused layer 2 (tiny matmul) + bias.
        h = jnp.maximum(acc_ref[...] + b1_ref[...], 0.0)
        out = jnp.dot(h, w2_ref[...], preferred_element_type=jnp.float32) + b2_ref[...]
        o_ref[...] = out.astype(o_ref.dtype)


def prepare_params(w1, b1, w2, b2):
    """One-time param prep: lane-pad small dims, cast the big weight to bf16.

    w1: (9216, 100) f32, b1: (100,), w2: (100, 30), b2: (30,).
    Run once (e.g. at load time); the results are what fcnet_forward consumes.
    """
    w1p = (
        jnp.zeros((IN_FEATURES, HIDDEN_PAD), jnp.bfloat16)
        .at[:, :HIDDEN].set(w1.astype(jnp.bfloat16))
    )
    b1p = jnp.zeros((1, HIDDEN_PAD), jnp.float32).at[:, :HIDDEN].set(b1)
    w2p = jnp.zeros((HIDDEN_PAD, OUT_PAD), jnp.float32).at[:HIDDEN, :OUT].set(w2)
    b2p = jnp.zeros((1, OUT_PAD), jnp.float32).at[:, :OUT].set(b2)
    return w1p, b1p, w2p, b2p


@jax.jit
def fcnet_forward(x, w1p, b1p, w2p, b2p):
    """x: (B, 9216) f32; params already prepared via prepare_params()."""
    B = x.shape[0]
    assert x.shape[1] == IN_FEATURES and IN_FEATURES % TK == 0

    xb = x.astype(jnp.bfloat16)
    kt = IN_FEATURES // TK

    cost = pl.CostEstimate(
        flops=2 * B * IN_FEATURES * HIDDEN_PAD + 2 * B * HIDDEN_PAD * OUT_PAD,
        transcendentals=0,
        bytes_accessed=(
            IN_FEATURES * HIDDEN_PAD * 2          # W1 (bf16)
            + B * IN_FEATURES * 2                 # x (bf16)
            + HIDDEN_PAD * OUT_PAD * 4            # W2
            + (HIDDEN_PAD + OUT_PAD) * 4          # biases
            + B * OUT_PAD * 4                     # output
        ),
    )

    out_padded = pl.pallas_call(
        _fcnet_kernel,
        out_shape=jax.ShapeDtypeStruct((B, OUT_PAD), jnp.float32),
        grid_spec=pltpu.PrefetchScalarGridSpec(
            num_scalar_prefetch=0,
            grid=(kt,),
            in_specs=[
                pl.BlockSpec((B, TK), lambda k: (0, k)),                # x tile (bf16)
                pl.BlockSpec((TK, HIDDEN_PAD), lambda k: (k, 0)),       # W1 tile (bf16)
                pl.BlockSpec((1, HIDDEN_PAD), lambda k: (0, 0)),        # b1 (resident)
                pl.BlockSpec((HIDDEN_PAD, OUT_PAD), lambda k: (0, 0)),  # W2 (resident)
                pl.BlockSpec((1, OUT_PAD), lambda k: (0, 0)),           # b2 (resident)
            ],
            out_specs=pl.BlockSpec((B, OUT_PAD), lambda k: (0, 0)),
            scratch_shapes=[pltpu.VMEM((B, HIDDEN_PAD), jnp.float32)],
        ),
        compiler_params=pltpu.CompilerParams(
            dimension_semantics=("arbitrary",)
        ),
        cost_estimate=cost,
    )(xb, w1p, b1p, w2p, b2p)

    return out_padded[:, :OUT]


def init_params(key):
    """Deterministic init mimicking nn.Linear's uniform(-1/sqrt(fan_in), 1/sqrt(fan_in))."""
    k1, k2, k3, k4 = jax.random.split(key, 4)
    bound1 = 1.0 / np.sqrt(IN_FEATURES)
    bound2 = 1.0 / np.sqrt(HIDDEN)
    # Stored already transposed relative to PyTorch (in_features, out_features).
    w1 = jax.random.uniform(k1, (IN_FEATURES, HIDDEN), jnp.float32, -bound1, bound1)
    b1 = jax.random.uniform(k2, (HIDDEN,), jnp.float32, -bound1, bound1)
    w2 = jax.random.uniform(k3, (HIDDEN, OUT), jnp.float32, -bound2, bound2)
    b2 = jax.random.uniform(k4, (OUT,), jnp.float32, -bound2, bound2)
    return w1, b1, w2, b2


if __name__ == "__main__":
    key = jax.random.PRNGKey(0)
    kx, kp = jax.random.split(key)

    B = 8  # small batch
    x = jax.random.normal(kx, (B, IN_FEATURES), jnp.float32)
    w1, b1, w2, b2 = init_params(kp)

    # One-time parameter prep (padding + bf16 cast), outside the hot path.
    w1p, b1p, w2p, b2p = prepare_params(w1, b1, w2, b2)
    w1p, b1p, w2p, b2p = jax.block_until_ready((w1p, b1p, w2p, b2p))

    out = jax.block_until_ready(fcnet_forward(x, w1p, b1p, w2p, b2p))

    # Pure-JAX f32 reference; tolerance relaxed for the bf16 weight/activation stream
    # (accumulation in the kernel is still f32).
    ref = jnp.maximum(x @ w1 + b1, 0.0) @ w2 + b2
    np.testing.assert_allclose(np.asarray(out), np.asarray(ref), rtol=2e-2, atol=2e-2)
    assert out.shape == (B, OUT)

    print("KERNEL_OK")
</pallas_src>

<mosaic_0001>
module attributes {stable_mosaic.version = 11 : i64} {
  func.func @_fcnet_kernel(%arg0: i32, %arg1: memref<8x4608xbf16, #tpu.memory_space<vmem>>, %arg2: memref<4608x128xbf16, #tpu.memory_space<vmem>>, %arg3: memref<1x128xf32, #tpu.memory_space<vmem>>, %arg4: memref<128x128xf32, #tpu.memory_space<vmem>>, %arg5: memref<1x128xf32, #tpu.memory_space<vmem>>, %arg6: memref<8x128xf32, #tpu.memory_space<vmem>>, %arg7: memref<8x128xf32, #tpu.memory_space<vmem>>) attributes {dimension_semantics = [#tpu.dimension_semantics<arbitrary>], iteration_bounds = array<i64: 2>, scalar_prefetch = 0 : i64, scratch_operands = 1 : i64, tpu.core_type = #tpu.core_type<tc>, window_params = [{transform_indices = @transform_0, window_bounds = array<i64: 8, 4608>}, {transform_indices = @transform_1, window_bounds = array<i64: 4608, 128>}, {pipeline_mode = #tpu.pipeline_mode<synchronous>, transform_indices = @transform_2, window_bounds = array<i64: 1, 128>}, {pipeline_mode = #tpu.pipeline_mode<synchronous>, transform_indices = @transform_3, window_bounds = array<i64: 128, 128>}, {pipeline_mode = #tpu.pipeline_mode<synchronous>, transform_indices = @transform_4, window_bounds = array<i64: 1, 128>}, {pipeline_mode = #tpu.pipeline_mode<synchronous>, transform_indices = @transform_5, window_bounds = array<i64: 8, 128>}]} {
    %c0_i32 = arith.constant 0 : i32
    %0 = arith.cmpi eq, %arg0, %c0_i32 : i32
    %1 = arith.extui %0 : i1 to i32
    %c0_i32_0 = arith.constant 0 : i32
    %2 = arith.cmpi ne, %1, %c0_i32_0 : i32
    scf.if %2 {
      %cst_9 = arith.constant 0.000000e+00 : f32
      %12 = vector.broadcast %cst_9 : f32 to vector<8x128xf32>
      %c0_10 = arith.constant 0 : index
      %c0_11 = arith.constant 0 : index
      %13 = vector.load %arg7[%c0_10, %c0_11] : memref<8x128xf32, #tpu.memory_space<vmem>>, vector<8x128xf32>
      tpu.vector_store %arg7[%c0_10, %c0_11], %12 {strides = array<i32>} : memref<8x128xf32, #tpu.memory_space<vmem>>, vector<8x128xf32>,
    } else {
    }
    %c0 = arith.constant 0 : index
    %c0_1 = arith.constant 0 : index
    %3 = vector.load %arg7[%c0, %c0_1] : memref<8x128xf32, #tpu.memory_space<vmem>>, vector<8x128xf32>
    %c0_2 = arith.constant 0 : index
    %c0_3 = arith.constant 0 : index
    %4 = vector.load %arg1[%c0_2, %c0_3] : memref<8x4608xbf16, #tpu.memory_space<vmem>>, vector<8x4608xbf16>
    %c0_4 = arith.constant 0 : index
    %c0_5 = arith.constant 0 : index
    %5 = vector.load %arg2[%c0_4, %c0_5] : memref<4608x128xbf16, #tpu.memory_space<vmem>>, vector<4608x128xbf16>
    %cst = arith.constant dense<0.000000e+00> : vector<8x128xf32>
    %6 = tpu.matmul %4, %5, %cst {dimension_numbers = #tpu.dot_dimension_numbers<[1], [0], [0], [1], [0, 0, 1, 1], [], []>} : vector<8x4608xbf16>, vector<4608x128xbf16>, vector<8x128xf32> -> vector<8x128xf32>
    %7 = arith.addf %3, %6 : vector<8x128xf32>
    %c0_6 = arith.constant 0 : index
    %c0_7 = arith.constant 0 : index
    %8 = vector.load %arg7[%c0_6, %c0_7] : memref<8x128xf32, #tpu.memory_space<vmem>>, vector<8x128xf32>
    tpu.vector_store %arg7[%c0_6, %c0_7], %7 {strides = array<i32>} : memref<8x128xf32, #tpu.memory_space<vmem>>, vector<8x128xf32>,
    %c1_i32 = arith.constant 1 : i32
    %9 = arith.cmpi eq, %arg0, %c1_i32 : i32
    %10 = arith.extui %9 : i1 to i32
    %c0_i32_8 = arith.constant 0 : i32
    %11 = arith.cmpi ne, %10, %c0_i32_8 : i32
    scf.if %11 {
      %c0_9 = arith.constant 0 : index
      %c0_10 = arith.constant 0 : index
      %12 = vector.load %arg7[%c0_9, %c0_10] : memref<8x128xf32, #tpu.memory_space<vmem>>, vector<8x128xf32>
      %c0_11 = arith.constant 0 : index
      %c0_12 = arith.constant 0 : index
      %13 = vector.load %arg3[%c0_11, %c0_12] : memref<1x128xf32, #tpu.memory_space<vmem>>, vector<1x128xf32>
      %14 = vector.broadcast %13 : vector<1x128xf32> to vector<8x128xf32>
      %15 = arith.addf %12, %14 : vector<8x128xf32>
      %cst_13 = arith.constant 0.000000e+00 : f32
      %16 = vector.broadcast %cst_13 : f32 to vector<8x128xf32>
      %17 = arith.maximumf %15, %16 : vector<8x128xf32>
      %c0_14 = arith.constant 0 : index
      %c0_15 = arith.constant 0 : index
      %18 = vector.load %arg4[%c0_14, %c0_15] : memref<128x128xf32, #tpu.memory_space<vmem>>, vector<128x128xf32>
      %cst_16 = arith.constant dense<0.000000e+00> : vector<8x128xf32>
      %19 = tpu.matmul %17, %18, %cst_16 {dimension_numbers = #tpu.dot_dimension_numbers<[1], [0], [0], [1], [0, 0, 1, 1], [], []>} : vector<8x128xf32>, vector<128x128xf32>, vector<8x128xf32> -> vector<8x128xf32>
      %c0_17 = arith.constant 0 : index
      %c0_18 = arith.constant 0 : index
      %20 = vector.load %arg5[%c0_17, %c0_18] : memref<1x128xf32, #tpu.memory_space<vmem>>, vector<1x128xf32>
      %21 = vector.broadcast %20 : vector<1x128xf32> to vector<8x128xf32>
      %22 = arith.addf %19, %21 : vector<8x128xf32>
      %c0_19 = arith.constant 0 : index
      %c0_20 = arith.constant 0 : index
      %23 = vector.load %arg6[%c0_19, %c0_20] : memref<8x128xf32, #tpu.memory_space<vmem>>, vector<8x128xf32>
      tpu.vector_store %arg6[%c0_19, %c0_20], %22 {strides = array<i32>} : memref<8x128xf32, #tpu.memory_space<vmem>>, vector<8x128xf32>,
    } else {
    }
    return
  }
  func.func @transform_0(%arg0: i32) -> (i32, i32) {
    %c0_i32 = arith.constant 0 : i32
    %c0_i32_0 = arith.constant 0 : i32
    return %c0_i32, %arg0 : i32, i32
  }
  func.func @transform_1(%arg0: i32) -> (i32, i32) {
    %c0_i32 = arith.constant 0 : i32
    %c0_i32_0 = arith.constant 0 : i32
    return %arg0, %c0_i32 : i32, i32
  }
  func.func @transform_2(%arg0: i32) -> (i32, i32) {
    %c0_i32 = arith.constant 0 : i32
    %c0_i32_0 = arith.constant 0 : i32
    %c0_i32_1 = arith.constant 0 : i32
    return %c0_i32, %c0_i32_0 : i32, i32
  }
  func.func @transform_3(%arg0: i32) -> (i32, i32) {
    %c0_i32 = arith.constant 0 : i32
    %c0_i32_0 = arith.constant 0 : i32
    %c0_i32_1 = arith.constant 0 : i32
    return %c0_i32, %c0_i32_0 : i32, i32
  }
  func.func @transform_4(%arg0: i32) -> (i32, i32) {
    %c0_i32 = arith.constant 0 : i32
    %c0_i32_0 = arith.constant 0 : i32
    %c0_i32_1 = arith.constant 0 : i32
    return %c0_i32, %c0_i32_0 : i32, i32
  }
  func.func @transform_5(%arg0: i32) -> (i32, i32) {
    %c0_i32 = arith.constant 0 : i32
    %c0_i32_0 = arith.constant 0 : i32
    %c0_i32_1 = arith.constant 0 : i32
    return %c0_i32, %c0_i32_0 : i32, i32
  }
}

</mosaic_0001>

<bundles_post_ra>
// kernel: fcnet_forward.1
= control target key start
LH: loop header
LB: loop body
LE: loop exit
PB: predicated region body
PF: predicated region fallthrough
CT: control target
= control target key end

     0   :  { %10 = vsyncpa [#allocation4], 0  ;;  %s5607_s0 = inlined_call_operand.vmem [shape: bf16[8,9216], index: 0, kind: input, shape index: {}]   ;;  %s5608_s1 = inlined_call_operand.hbm [shape: bf16[9216,128], index: 1, kind: input, shape index: {}]   ;;  %s5609_s2 = inlined_call_operand.hbm [shape: f32[1,128], index: 2, kind: input, shape index: {}]   ;;  %s5610_s3 = inlined_call_operand.hbm [shape: f32[128,128], index: 3, kind: input, shape index: {}]   ;;  %s5611_s4 = inlined_call_operand.hbm [shape: f32[1,128], index: 4, kind: input, shape index: {}]   ;;  %s5612_s5 = inlined_call_operand.hbm [shape: f32[8,128], index: 5, kind: output, shape index: {}]  }
   0x1   :  { %12 = vsyncpa [#allocation4 + $0x1], 0 }
   0x2   :  { %13 = vsyncpa [#allocation7], 0 }
   0x3   :  { %14 = vsyncpa [#allocation10], 0 }
   0x4   :  { %15 = vsyncpa [#allocation5], 0  ;;  %s5158_s18 = smov 0   ;;  %s5160_s19 = smov 0  }
   0x5   :  { %s5162_s20 = smov 0   ;;  %s5164_s21 = smov 0  }
   0x6 LB: > { %s5177_s22 = sadd.s32 4294967295, %s5117_s21   ;;  %p67_p0 = scmp.ne.s32.totalorder %s5109_s19, %s5105_s18  ;;  %s5117_s21 = sphi %s5164_s21, %s5621_s21   ;;  %s5113_s20 = sphi %s5162_s20, %s5620_s20   ;;  %s5109_s19 = sphi %s5160_s19, %s5619_s19   ;;  %s5105_s18 = sphi %s5158_s18, %s5618_s18  }
   0x7   : > { %p68_p1 = scmp.eq.s32.totalorder %s5177_s22, 0  ;;  %p3379_p2 = scmp.ge.s32.totalorder %s5117_s21, 1 }
   0x8   : > { %p162_p3 = scmp.lt.s32.totalorder %s5117_s21, 3  ;;  %p3380_p4 = scmp.ne.s32.totalorder %s5177_s22, 0 }
   0x9   : > { %p5186_p5 = por %p68_p1, %p67_p0  ;;  %s174_s26 = sshll.u32 %s5609_s2, 4  ;;  %s175_s26 = int_to_ptr.hbm [resolvable:$true] %s174_s26 }
   0xa   : > { %p5193_p6 = pnand %p3379_p2, %p162_p3  ;;  %s5119_s28 = smov [#allocation6]  }
   0xb   : > { %s176_s29 = sshll.u32 %s5119_s28, 4  ;;  %s185_s7 = sshll.u32 %s5610_s3, 4  ;;  %s177_s29 = int_to_ptr.vmem [resolvable:$true] %s176_s29  ;;  %s186_s7 = int_to_ptr.hbm [resolvable:$true] %s185_s7 }
   0xc   : > { %p4857_p7 = pneg %p5193_p6  ;;  %s5120_s9 = smov [#allocation8]  }
   0xd   : > { %s187_s10 = sshll.u32 %s5120_s9, 4  ;;  %s5121_s11 = smov 128   ;;  %s188_s10 = int_to_ptr.vmem [resolvable:$true] %s187_s10 }
   0xe   : > { %p5204_p8 = pnand %p4857_p7, %p68_p1  ;;  %s5122_s12 = smov 8  }
   0xf   : > { %s200_s15 = sshll.u32 %s5611_s4, 4  ;;  %s5123_s16 = smov [#allocation9]   ;;  %s201_s15 = int_to_ptr.hbm [resolvable:$true] %s200_s15 }
  0x10   : > { %4860 = dma.hbm_to_vmem [thread:$0]  (!%p5204_p8), %s175_s26, 16, %s177_s29, [#allocation7]  }
  0x11   : > { %4863 = dma.hbm_to_vmem [thread:$0]  (!%p5204_p8), %s186_s7, 2048, %s188_s10, [#allocation7], %s5121_s11, %s5121_s11, %s5122_s12  }
  0x12   : > { %s202_s17 = sshll.u32 %s5123_s16, 4  ;;  %s5218_s18 = sadd.s32 1, %s5117_s21   ;;  %s203_s17 = int_to_ptr.vmem [resolvable:$true] %s202_s17 }
  0x13   : > { %4866 = dma.hbm_to_vmem [thread:$0]  (!%p5204_p8), %s201_s15, 16, %s203_s17, [#allocation10]  }
  0x14   : > { %s51_s24 = ssub.s32 %s5117_s21, %s5218_s18  ;;  %s54_s25 = sadd.s32 1, %s5113_s20 }
  0x15   : > { %p52_p9 = scmp.eq.s32.totalorder %s51_s24, 0  ;;  %p61_p10 = scmp.ne.s32.totalorder %s5113_s20, %s5109_s19 }
  0x16   : > { %p62_p11 = scmp.eq.s32.totalorder %s5117_s21, 0  ;;  %p4874_p12 = scmp.lt.s32.totalorder %s5117_s21, 2 }
  0x17   : > { %s5228_s26 = scalar_select %p52_p9, %s5113_s20, %s54_s25  }
  0x18   : > { %p63_p13 = por %p62_p11, %p61_p10  ;;  %s222_s28 = sand.u32 1, %s5113_s20  }
  0x19   : > { %s4837_s29 = smul.u32 2304, %s222_s28  ;;  %s223_s13 = scalar_lea.sflag [#allocation4], %s222_s28 }
  0x1a   : > { %s4548_s30 = smul.u32 2304, %s5117_s21  ;;  %p5232_p0 = pnand %p4874_p12, %p63_p13 }
  0x1b   : > { %s226_s10 = scalar_lea.vmem [#allocation3], %s4837_s29  ;;  %s5020_s17 = scalar_lea.hbm %s5608_s1, 4608 }
  0x1c   : > { %s231_s9 = scalar_lea.hbm %s5608_s1, %s4548_s30  ;;  %s234_s11 = sshll.u32 %s226_s10, 4  ;;  %s235_s11 = int_to_ptr.vmem [resolvable:$true] %s234_s11 }
  0x1d   : > { %s232_s12 = sshll.u32 %s231_s9, 4  ;;  %p5017_p3 = pneg %p5232_p0  ;;  %s233_s12 = int_to_ptr.hbm [resolvable:$true] %s232_s12 }
  0x1e   : > { %s5013_s14 = sshra.s32 %s233_s12, 4  ;;  %s5014_s14 = int_to_ptr.hbm [resolvable:$true] %s5013_s14 }
  0x1f   : > { %s5015_s15 = scalar_lea.hbm %s5014_s14, 2304  ;;  %p5021_p9 = scmp.lt.s32.totalorder %s5014_s14, %s5608_s1 }
  0x20   : > { %p5016_p2 = scmp.ne.s32.totalorder %s5014_s14, %s5015_s15  ;;  %p5022_p10 = scmp.lt.s32.totalorder %s5020_s17, %s5015_s15 }
  0x22   : > { %p5018_p7 = pnand %p5017_p3, %p5016_p2  ;;  %p5023_p11 = por %p5022_p10, %p5021_p9 }
  0x24   : > { %p5019_p8 = pneg %p5018_p7 }
  0x26   : > { %p5024_p12 = pnand %p5023_p11, %p5019_p8 }
  0x28   : > { %5027 = shalt.err (!%p5024_p12)
}
  0x29   : > { %s5124_s28 = smov 64   ;;  %s5125_s29 = smov 4  }
  0x2a   : > { %4870 = dma.hbm_to_vmem [thread:$0]  (!%p5232_p0), %s233_s12, 36864, %s235_s11, %s223_s13, %s5124_s28, %s5124_s28, %s5125_s29  }
  0x2b   : > { %246 = sbr.rel (%p5193_p6) target bundleno = 659 (0x293), region = 40  ;;  %s248_s30 = sand.u32 (!%p5193_p6), 1, %s5109_s19  }
  0x2c   : > { %s4838_s7 = smul.u32 (!%p5193_p6), 2304, %s248_s30  ;;  %s249_s8 = scalar_lea.sflag (!%p5193_p6), [#allocation4], %s248_s30 }
  0x2e   : > { %s5252_s9 = scalar_lea.vmem (!%p5193_p6), [#allocation3], %s4838_s7 }
  0x30   : > { %5088 = dma.done.wait (%p5186_p5), %s249_s8, 36864  }
  0x31   : > { %5090 = vsyncadd (%p5186_p5), %s249_s8, 4294930432 }
  0x32   : > { %5092 = dma.done.wait (%p68_p1), [#allocation7], 2064  }
  0x33   : > { %5094 = vsyncadd (%p68_p1), [#allocation7], 4294965232 }
  0x34   : > { %5096 = dma.done.wait (%p68_p1), [#allocation10], 16  }
  0x35   : > { %5098 = vsyncadd (%p68_p1), [#allocation10], 4294967280  ;;  %s295_s27 = smul.u32 36, %s5177_s22 }
  0x37   : > { %p296_p6 = scmp.lt.s32.totalorder %s295_s27, 71  ;;  %305 = sbr.rel (%p3380_p4) target bundleno = 62 (0x3e), region = 60 }
  0x39   : > { %s5623_s27 = smov (!%p296_p6, %s295_s27), 71 }
  0x3a   : > { %s3389_s6 = sshll.u32 %s5623_s27, 2 }
  0x3b   : > { %s5270_s11 = scalar_lea.vmem %s5607_s0, %s3389_s6 }
  0x3c   : > { %v5126_v0 = vmov 0.0  }
  0x3d   : > { %306 = vst [vmem:[#allocation2] sm:$0xff] %v5126_v0 }
  0x3e PF: > { %v4556_v1 = vld [vmem:[%s5252_s9 + $0x38] sm:$0xff]  ;;  %v4555_v5 = vld [vmem:[%s5252_s9 + $0x30] sm:$0xff]  ;;  %v4554_v9 = vld [vmem:[%s5252_s9 + $0x28] sm:$0xff]  ;;  %p4543_p1 = scmp.ne.s32.totalorder %s5177_s22, 1 }
  0x3f   : > { %v4564_v2 = vld [vmem:[%s5252_s9 + $0x78] sm:$0xff]  ;;  %2756 = vmatpush.bf16.msra.mxu0 %v4556_v1  ;;  %v4563_v6 = vld [vmem:[%s5252_s9 + $0x70] sm:$0xff]  ;;  %v4562_v10 = vld [vmem:[%s5252_s9 + $0x68] sm:$0xff] }
  0x40   : > { %v4572_v3 = vld [vmem:[%s5252_s9 + $0xb8] sm:$0xff]  ;;  %2769 = vmatpush.bf16.msra.mxu1 %v4564_v2  ;;  %v4571_v7 = vld [vmem:[%s5252_s9 + $0xb0] sm:$0xff]  ;;  %v4570_v11 = vld [vmem:[%s5252_s9 + $0xa8] sm:$0xff] }
  0x41   : > { %v4580_v4 = vld [vmem:[%s5252_s9 + $0xf8] sm:$0xff]  ;;  %2782 = vmatpush.bf16.msra.mxu2 %v4572_v3  ;;  %v4579_v8 = vld [vmem:[%s5252_s9 + $0xf0] sm:$0xff]  ;;  %v4578_v12 = vld [vmem:[%s5252_s9 + $0xe8] sm:$0xff] }
  0x42   : > { %2795 = vmatpush.bf16.msra.mxu3 %v4580_v4  ;;  %v4553_v13 = vld [vmem:[%s5252_s9 + $0x20] sm:$0xff]  ;;  %v4552_v17 = vld [vmem:[%s5252_s9 + $0x18] sm:$0xff]  ;;  %v4551_v21 = vld [vmem:[%s5252_s9 + $0x10] sm:$0xff] }
  0x43   : > { %2757 = vmatpush.bf16.msra.mxu0 %v4555_v5  ;;  %v4561_v14 = vld [vmem:[%s5252_s9 + $0x60] sm:$0xff]  ;;  %v4560_v18 = vld [vmem:[%s5252_s9 + $0x58] sm:$0xff]  ;;  %v4559_v22 = vld [vmem:[%s5252_s9 + $0x50] sm:$0xff] }
  0x44   : > { %2770 = vmatpush.bf16.msra.mxu1 %v4563_v6  ;;  %v4569_v15 = vld [vmem:[%s5252_s9 + $0xa0] sm:$0xff]  ;;  %v4568_v19 = vld [vmem:[%s5252_s9 + $0x98] sm:$0xff]  ;;  %v4567_v23 = vld [vmem:[%s5252_s9 + $0x90] sm:$0xff] }
  0x45   : > { %2783 = vmatpush.bf16.msra.mxu2 %v4571_v7  ;;  %v4577_v16 = vld [vmem:[%s5252_s9 + $0xe0] sm:$0xff]  ;;  %v4576_v20 = vld [vmem:[%s5252_s9 + $0xd8] sm:$0xff]  ;;  %v4575_v24 = vld [vmem:[%s5252_s9 + $0xd0] sm:$0xff] }
  0x46   : > { %2796 = vmatpush.bf16.msra.mxu3 %v4579_v8  ;;  %v4550_v25 = vld [vmem:[%s5252_s9 + $0x8] sm:$0xff]  ;;  %v309_v29 = vld [vmem:[%s5270_s11 + $0x8] sm:$0xff]  ;;  %v308_v30 = vld [vmem:[%s5270_s11] sm:$0xff] }
  0x47   : > { %2758 = vmatpush.bf16.msra.mxu0 %v4554_v9  ;;  %v4558_v26 = vld [vmem:[%s5252_s9 + $0x48] sm:$0xff]  ;;  %v4549_v31 = vld [vmem:[%s5252_s9] sm:$0xff]  ;;  %v922_v33 = vunpack.c.l.b16 %v309_v29  ;;  %v920_v34 = vunpack.c.l.b16 %v308_v30  ;;  %v923_v37 = vunpack.c.h.b16 %v309_v29  ;;  %v921_v38 = vunpack.c.h.b16 %v308_v30  ;;  %v4588_v39 = vld [vmem:[%s5252_s9 + $0x138] sm:$0xff] }
  0x48   : > { %2771 = vmatpush.bf16.msra.mxu1 %v4562_v10  ;;  %v4566_v27 = vld [vmem:[%s5252_s9 + $0x88] sm:$0xff]  ;;  %v4557_v32 = vld [vmem:[%s5252_s9 + $0x40] sm:$0xff]  ;;  %v4596_v40 = vld [vmem:[%s5252_s9 + $0x178] sm:$0xff] }
  0x49   : > { %2784 = vmatpush.bf16.msra.mxu2 %v4570_v11  ;;  %v4574_v28 = vld [vmem:[%s5252_s9 + $0xc8] sm:$0xff]  ;;  %v4565_v35 = vld [vmem:[%s5252_s9 + $0x80] sm:$0xff]  ;;  %v4604_v41 = vld [vmem:[%s5252_s9 + $0x1b8] sm:$0xff]  ;;  %v958_v43 = vpack.c.b16 %v922_v33, %v922_v33  ;;  %v956_v44 = vpack.c.b16 %v920_v34, %v920_v34  ;;  %v959_v45 = vpack.c.b16 %v923_v37, %v923_v37  ;;  %v957_v46 = vpack.c.b16 %v921_v38, %v921_v38 }
  0x4a   : > { %2797 = vmatpush.bf16.msra.mxu3 %v4578_v12  ;;  %v4573_v36 = vld [vmem:[%s5252_s9 + $0xc0] sm:$0xff]  ;;  %v4612_v42 = vld [vmem:[%s5252_s9 + $0x1f8] sm:$0xff]  ;;  %v4587_v47 = vld [vmem:[%s5252_s9 + $0x130] sm:$0xff] }
  0x4b   : > { %2759 = vmatpush.bf16.msra.mxu0 %v4553_v13  ;;  %v4595_v48 = vld [vmem:[%s5252_s9 + $0x170] sm:$0xff]  ;;  %v4586_v51 = vld [vmem:[%s5252_s9 + $0x128] sm:$0xff]  ;;  %v4585_v55 = vld [vmem:[%s5252_s9 + $0x120] sm:$0xff] }
  0x4c   : > { %2772 = vmatpush.bf16.msra.mxu1 %v4561_v14  ;;  %v4603_v49 = vld [vmem:[%s5252_s9 + $0x1b0] sm:$0xff]  ;;  %v4594_v52 = vld [vmem:[%s5252_s9 + $0x168] sm:$0xff]  ;;  %v4593_v56 = vld [vmem:[%s5252_s9 + $0x160] sm:$0xff] }
  0x4d   : > { %2785 = vmatpush.bf16.msra.mxu2 %v4569_v15  ;;  %v4611_v50 = vld [vmem:[%s5252_s9 + $0x1f0] sm:$0xff]  ;;  %v4602_v53 = vld [vmem:[%s5252_s9 + $0x1a8] sm:$0xff]  ;;  %v4601_v57 = vld [vmem:[%s5252_s9 + $0x1a0] sm:$0xff] }
  0x4e   : > { %2798 = vmatpush.bf16.msra.mxu3 %v4577_v16  ;;  %v4610_v54 = vld [vmem:[%s5252_s9 + $0x1e8] sm:$0xff]  ;;  %v4609_v58 = vld [vmem:[%s5252_s9 + $0x1e0] sm:$0xff]  ;;  %v4584_v59 = vld [vmem:[%s5252_s9 + $0x118] sm:$0xff] }
  0x4f   : > { %2760 = vmatpush.bf16.msra.mxu0 %v4552_v17  ;;  %v4592_v60 = vld [vmem:[%s5252_s9 + $0x158] sm:$0xff]  ;;  %v4583_v63 = vld [vmem:[%s5252_s9 + $0x110] sm:$0xff]  ;;  %v4582_v3 = vld [vmem:[%s5252_s9 + $0x108] sm:$0xff] }
  0x50   : > { %2773 = vmatpush.bf16.msra.mxu1 %v4560_v18  ;;  %v4600_v61 = vld [vmem:[%s5252_s9 + $0x198] sm:$0xff]  ;;  %v4591_v0 = vld [vmem:[%s5252_s9 + $0x150] sm:$0xff]  ;;  %v4590_v4 = vld [vmem:[%s5252_s9 + $0x148] sm:$0xff] }
  0x51   : > { %2786 = vmatpush.bf16.msra.mxu2 %v4568_v19  ;;  %v4608_v62 = vld [vmem:[%s5252_s9 + $0x1d8] sm:$0xff]  ;;  %v4599_v1 = vld [vmem:[%s5252_s9 + $0x190] sm:$0xff]  ;;  %v4598_v5 = vld [vmem:[%s5252_s9 + $0x188] sm:$0xff] }
  0x52   : > { %2799 = vmatpush.bf16.msra.mxu3 %v4576_v20  ;;  %v4607_v2 = vld [vmem:[%s5252_s9 + $0x1d0] sm:$0xff]  ;;  %v4606_v6 = vld [vmem:[%s5252_s9 + $0x1c8] sm:$0xff]  ;;  %v4581_v9 = vld [vmem:[%s5252_s9 + $0x100] sm:$0xff] }
  0x53   : > { %2761 = vmatpush.bf16.msra.mxu0 %v4551_v21  ;;  %v311_v7 = vld [vmem:[%s5270_s11 + $0x18] sm:$0xff]  ;;  %v310_v8 = vld [vmem:[%s5270_s11 + $0x10] sm:$0xff]  ;;  %v4589_v10 = vld [vmem:[%s5252_s9 + $0x140] sm:$0xff] }
  0x54   : > { %2774 = vmatpush.bf16.msra.mxu1 %v4559_v22  ;;  %v926_v11 = vunpack.c.l.b16 %v311_v7  ;;  %v924_v12 = vunpack.c.l.b16 %v310_v8  ;;  %v4597_v13 = vld [vmem:[%s5252_s9 + $0x180] sm:$0xff]  ;;  %v927_v15 = vunpack.c.h.b16 %v311_v7  ;;  %v925_v16 = vunpack.c.h.b16 %v310_v8  ;;  %v4620_v17 = vld [vmem:[%s5252_s9 + $0x238] sm:$0xff]  ;;  %v4618_v29 = vld [vmem:[%s5252_s9 + $0x228] sm:$0xff] }
  0x55   : > { %2787 = vmatpush.bf16.msra.mxu2 %v4567_v23  ;;  %v4605_v14 = vld [vmem:[%s5252_s9 + $0x1c0] sm:$0xff]  ;;  %v4628_v18 = vld [vmem:[%s5252_s9 + $0x278] sm:$0xff]  ;;  %v4626_v30 = vld [vmem:[%s5252_s9 + $0x268] sm:$0xff] }
  0x56   : > { %2800 = vmatpush.bf16.msra.mxu3 %v4575_v24  ;;  %v4636_v19 = vld [vmem:[%s5252_s9 + $0x2b8] sm:$0xff]  ;;  %v962_v21 = vpack.c.b16 %v926_v11, %v926_v11  ;;  %v960_v22 = vpack.c.b16 %v924_v12, %v924_v12  ;;  %v963_v23 = vpack.c.b16 %v927_v15, %v927_v15  ;;  %v961_v24 = vpack.c.b16 %v925_v16, %v925_v16  ;;  %v4617_v33 = vld [vmem:[%s5252_s9 + $0x220] sm:$0xff]  ;;  %v4650_v7 = vld [vmem:[%s5252_s9 + $0x328] sm:$0xff] }
  0x57   : > { %2762 = vmatpush.bf16.msra.mxu0 %v4550_v25  ;;  %v4644_v20 = vld [vmem:[%s5252_s9 + $0x2f8] sm:$0xff]  ;;  %v4619_v25 = vld [vmem:[%s5252_s9 + $0x230] sm:$0xff]  ;;  %v4625_v34 = vld [vmem:[%s5252_s9 + $0x260] sm:$0xff] }
  0x58   : > { %2775 = vmatpush.bf16.msra.mxu1 %v4558_v26  ;;  %v4627_v26 = vld [vmem:[%s5252_s9 + $0x270] sm:$0xff]  ;;  %v4616_v37 = vld [vmem:[%s5252_s9 + $0x218] sm:$0xff]  ;;  %v4658_v8 = vld [vmem:[%s5252_s9 + $0x368] sm:$0xff] }
  0x59   : > { %2788 = vmatpush.bf16.msra.mxu2 %v4566_v27  ;;  %v4635_v27 = vld [vmem:[%s5252_s9 + $0x2b0] sm:$0xff]  ;;  %v4624_v38 = vld [vmem:[%s5252_s9 + $0x258] sm:$0xff]  ;;  %v4649_v11 = vld [vmem:[%s5252_s9 + $0x320] sm:$0xff] }
  0x5a   : > { %2801 = vmatpush.bf16.msra.mxu3 %v4574_v28  ;;  %v4643_v28 = vld [vmem:[%s5252_s9 + $0x2f0] sm:$0xff]  ;;  %v4657_v12 = vld [vmem:[%s5252_s9 + $0x360] sm:$0xff]  ;;  %v4648_v15 = vld [vmem:[%s5252_s9 + $0x318] sm:$0xff] }
  0x5b   : > { %2763 = vmatpush.bf16.msra.mxu0 %v4549_v31  ;;  %v4634_v31 = vld [vmem:[%s5252_s9 + $0x2a8] sm:$0xff]  ;;  %v4656_v16 = vld [vmem:[%s5252_s9 + $0x358] sm:$0xff] }
  0x5c   : > { %2776 = vmatpush.bf16.msra.mxu1 %v4557_v32  ;;  %v4642_v32 = vld [vmem:[%s5252_s9 + $0x2e8] sm:$0xff] }
  0x5d   : > { %2789 = vmatpush.bf16.msra.mxu2 %v4565_v35  ;;  %v4633_v35 = vld [vmem:[%s5252_s9 + $0x2a0] sm:$0xff] }
  0x5e   : > { %2802 = vmatpush.bf16.msra.mxu3 %v4573_v36  ;;  %2764 = vmatmul.bf16.vlgmr.msra.gmra.mxu0 %v956_v44  ;;  %v4641_v36 = vld [vmem:[%s5252_s9 + $0x2e0] sm:$0xff]  ;;  %v4639_v44 = vld [vmem:[%s5252_s9 + $0x2d0] sm:$0xff] }
  0x5f   : > { %2808 = vmatpush.bf16.msrb.mxu0 %v4588_v39  ;;  %2777 = vmatmul.bf16.vlgmr.msra.gmra.mxu1 %v957_v46  ;;  %v4632_v39 = vld [vmem:[%s5252_s9 + $0x298] sm:$0xff]  ;;  %v4622_v46 = vld [vmem:[%s5252_s9 + $0x248] sm:$0xff] }
  0x60   : > { %2821 = vmatpush.bf16.msrb.mxu1 %v4596_v40  ;;  %2790 = vmatmul.bf16.vlgmr.msra.gmra.mxu2 %v958_v43  ;;  %v4640_v40 = vld [vmem:[%s5252_s9 + $0x2d8] sm:$0xff]  ;;  %v4631_v43 = vld [vmem:[%s5252_s9 + $0x290] sm:$0xff] }
  0x61   : > { %2834 = vmatpush.bf16.msrb.mxu2 %v4604_v41  ;;  %2803 = vmatmul.bf16.vlgmr.msra.gmra.mxu3 %v959_v45  ;;  %v4615_v41 = vld [vmem:[%s5252_s9 + $0x210] sm:$0xff]  ;;  %v4614_v45 = vld [vmem:[%s5252_s9 + $0x208] sm:$0xff] }
  0x62   : > { %2847 = vmatpush.bf16.msrb.mxu3 %v4612_v42  ;;  %v4623_v42 = vld [vmem:[%s5252_s9 + $0x250] sm:$0xff] }
  0x63   : > { %2809 = vmatpush.bf16.msrb.mxu0 %v4587_v47  ;;  %v4630_v47 = vld [vmem:[%s5252_s9 + $0x288] sm:$0xff] }
  0x64   : > { %2822 = vmatpush.bf16.msrb.mxu1 %v4595_v48  ;;  %v4638_v48 = vld [vmem:[%s5252_s9 + $0x2c8] sm:$0xff] }
  0x65   : > { %2835 = vmatpush.bf16.msrb.mxu2 %v4603_v49  ;;  %v312_v49 = vld [vmem:[%s5270_s11 + $0x20] sm:$0xff] }
  0x66   : > { %2848 = vmatpush.bf16.msrb.mxu3 %v4611_v50  ;;  %v313_v50 = vld [vmem:[%s5270_s11 + $0x28] sm:$0xff] }
  0x67   : > { %2810 = vmatpush.bf16.msrb.mxu0 %v4586_v51  ;;  %v4613_v51 = vld [vmem:[%s5252_s9 + $0x200] sm:$0xff] }
  0x68   : > { %2823 = vmatpush.bf16.msrb.mxu1 %v4594_v52  ;;  %v4621_v52 = vld [vmem:[%s5252_s9 + $0x240] sm:$0xff] }
  0x69   : > { %2836 = vmatpush.bf16.msrb.mxu2 %v4602_v53  ;;  %v928_v53 = vunpack.c.l.b16 %v312_v49 }
  0x6a   : > { %2849 = vmatpush.bf16.msrb.mxu3 %v4610_v54  ;;  %v930_v54 = vunpack.c.l.b16 %v313_v50 }
  0x6b   : > { %2811 = vmatpush.bf16.msrb.mxu0 %v4585_v55  ;;  %v4629_v55 = vld [vmem:[%s5252_s9 + $0x280] sm:$0xff] }
  0x6c   : > { %2824 = vmatpush.bf16.msrb.mxu1 %v4593_v56  ;;  %v4637_v56 = vld [vmem:[%s5252_s9 + $0x2c0] sm:$0xff] }
  0x6d   : > { %2837 = vmatpush.bf16.msrb.mxu2 %v4601_v57  ;;  %v929_v57 = vunpack.c.h.b16 %v312_v49  ;;  %v4682_v49 = vld [vmem:[%s5252_s9 + $0x428] sm:$0xff] }
  0x6e   : > { %2850 = vmatpush.bf16.msrb.mxu3 %v4609_v58  ;;  %v931_v58 = vunpack.c.h.b16 %v313_v50  ;;  %v4690_v50 = vld [vmem:[%s5252_s9 + $0x468] sm:$0xff] }
  0x6f   : > { %2812 = vmatpush.bf16.msrb.mxu0 %v4584_v59  ;;  %v4652_v59 = vld [vmem:[%s5252_s9 + $0x338] sm:$0xff] }
  0x70   : > { %2825 = vmatpush.bf16.msrb.mxu1 %v4592_v60  ;;  %v4660_v60 = vld [vmem:[%s5252_s9 + $0x378] sm:$0xff] }
  0x71   : > { %2838 = vmatpush.bf16.msrb.mxu2 %v4600_v61  ;;  %v4668_v61 = vld [vmem:[%s5252_s9 + $0x3b8] sm:$0xff] }
  0x72   : > { %2851 = vmatpush.bf16.msrb.mxu3 %v4608_v62  ;;  %v4676_v62 = vld [vmem:[%s5252_s9 + $0x3f8] sm:$0xff] }
  0x73   : > { %2813 = vmatpush.bf16.msrb.mxu0 %v4583_v63  ;;  %v964_v63 = vpack.c.b16 %v928_v53, %v928_v53  ;;  %v4681_v53 = vld [vmem:[%s5252_s9 + $0x420] sm:$0xff] }
  0x74   : > { %2826 = vmatpush.bf16.msrb.mxu1 %v4591_v0  ;;  %v966_v0 = vpack.c.b16 %v930_v54, %v930_v54  ;;  %v4689_v54 = vld [vmem:[%s5252_s9 + $0x460] sm:$0xff] }
  0x75   : > { %2839 = vmatpush.bf16.msrb.mxu2 %v4599_v1  ;;  %v965_v1 = vpack.c.b16 %v929_v57, %v929_v57  ;;  %v4680_v57 = vld [vmem:[%s5252_s9 + $0x418] sm:$0xff] }
  0x76   : > { %2852 = vmatpush.bf16.msrb.mxu3 %v4607_v2  ;;  %v967_v2 = vpack.c.b16 %v931_v58, %v931_v58  ;;  %v4688_v58 = vld [vmem:[%s5252_s9 + $0x458] sm:$0xff] }
  0x77   : > { %2814 = vmatpush.bf16.msrb.mxu0 %v4582_v3  ;;  %v4651_v3 = vld [vmem:[%s5252_s9 + $0x330] sm:$0xff] }
  0x78   : > { %2827 = vmatpush.bf16.msrb.mxu1 %v4590_v4  ;;  %v4659_v4 = vld [vmem:[%s5252_s9 + $0x370] sm:$0xff] }
  0x79   : > { %2840 = vmatpush.bf16.msrb.mxu2 %v4598_v5  ;;  %v4667_v5 = vld [vmem:[%s5252_s9 + $0x3b0] sm:$0xff] }
  0x7a   : > { %2853 = vmatpush.bf16.msrb.mxu3 %v4606_v6  ;;  %v4675_v6 = vld [vmem:[%s5252_s9 + $0x3f0] sm:$0xff] }
  0x7b   : > { %2815 = vmatpush.bf16.msrb.mxu0 %v4581_v9  ;;  %v4666_v9 = vld [vmem:[%s5252_s9 + $0x3a8] sm:$0xff] }
  0x7c   : > { %2828 = vmatpush.bf16.msrb.mxu1 %v4589_v10  ;;  %v4674_v10 = vld [vmem:[%s5252_s9 + $0x3e8] sm:$0xff] }
  0x7d   : > { %2841 = vmatpush.bf16.msrb.mxu2 %v4597_v13  ;;  %v4665_v13 = vld [vmem:[%s5252_s9 + $0x3a0] sm:$0xff] }
  0x7e   : > { %2854 = vmatpush.bf16.msrb.mxu3 %v4605_v14  ;;  %2816 = vmatmul.bf16.vlgmr.msrb.gmra.mxu0 %v960_v22  ;;  %v4673_v14 = vld [vmem:[%s5252_s9 + $0x3e0] sm:$0xff]  ;;  %v4671_v22 = vld [vmem:[%s5252_s9 + $0x3d0] sm:$0xff] }
  0x7f   : > { %2860 = vmatpush.bf16.msra.mxu0 %v4620_v17  ;;  %2829 = vmatmul.bf16.vlgmr.msrb.gmra.mxu1 %v961_v24  ;;  %v4664_v17 = vld [vmem:[%s5252_s9 + $0x398] sm:$0xff]  ;;  %v4654_v24 = vld [vmem:[%s5252_s9 + $0x348] sm:$0xff] }
  0x80   : > { %2873 = vmatpush.bf16.msra.mxu1 %v4628_v18  ;;  %2842 = vmatmul.bf16.vlgmr.msrb.gmra.mxu2 %v962_v21  ;;  %v4672_v18 = vld [vmem:[%s5252_s9 + $0x3d8] sm:$0xff]  ;;  %v4663_v21 = vld [vmem:[%s5252_s9 + $0x390] sm:$0xff] }
  0x81   : > { %2886 = vmatpush.bf16.msra.mxu2 %v4636_v19  ;;  %2855 = vmatmul.bf16.vlgmr.msrb.gmra.mxu3 %v963_v23  ;;  %v4647_v19 = vld [vmem:[%s5252_s9 + $0x310] sm:$0xff]  ;;  %v4646_v23 = vld [vmem:[%s5252_s9 + $0x308] sm:$0xff] }
  0x82   : > { %2899 = vmatpush.bf16.msra.mxu3 %v4644_v20  ;;  %v4655_v20 = vld [vmem:[%s5252_s9 + $0x350] sm:$0xff] }
  0x83   : > { %2861 = vmatpush.bf16.msra.mxu0 %v4619_v25  ;;  %v4662_v25 = vld [vmem:[%s5252_s9 + $0x388] sm:$0xff] }
  0x84   : > { %2874 = vmatpush.bf16.msra.mxu1 %v4627_v26  ;;  %v4670_v26 = vld [vmem:[%s5252_s9 + $0x3c8] sm:$0xff] }
  0x85   : > { %2887 = vmatpush.bf16.msra.mxu2 %v4635_v27  ;;  %v314_v27 = vld [vmem:[%s5270_s11 + $0x30] sm:$0xff] }
  0x86   : > { %2900 = vmatpush.bf16.msra.mxu3 %v4643_v28  ;;  %v315_v28 = vld [vmem:[%s5270_s11 + $0x38] sm:$0xff] }
  0x87   : > { %2862 = vmatpush.bf16.msra.mxu0 %v4618_v29  ;;  %v4645_v29 = vld [vmem:[%s5252_s9 + $0x300] sm:$0xff] }
  0x88   : > { %2875 = vmatpush.bf16.msra.mxu1 %v4626_v30  ;;  %v4653_v30 = vld [vmem:[%s5252_s9 + $0x340] sm:$0xff] }
  0x89   : > { %2888 = vmatpush.bf16.msra.mxu2 %v4634_v31  ;;  %v932_v31 = vunpack.c.l.b16 %v314_v27 }
  0x8a   : > { %2901 = vmatpush.bf16.msra.mxu3 %v4642_v32  ;;  %v934_v32 = vunpack.c.l.b16 %v315_v28 }
  0x8b   : > { %2863 = vmatpush.bf16.msra.mxu0 %v4617_v33  ;;  %v4661_v33 = vld [vmem:[%s5252_s9 + $0x380] sm:$0xff] }
  0x8c   : > { %2876 = vmatpush.bf16.msra.mxu1 %v4625_v34  ;;  %v4669_v34 = vld [vmem:[%s5252_s9 + $0x3c0] sm:$0xff] }
  0x8d   : > { %2889 = vmatpush.bf16.msra.mxu2 %v4633_v35  ;;  %v933_v35 = vunpack.c.h.b16 %v314_v27  ;;  %v4714_v27 = vld [vmem:[%s5252_s9 + $0x528] sm:$0xff] }
  0x8e   : > { %2902 = vmatpush.bf16.msra.mxu3 %v4641_v36  ;;  %v935_v36 = vunpack.c.h.b16 %v315_v28  ;;  %v4722_v28 = vld [vmem:[%s5252_s9 + $0x568] sm:$0xff] }
  0x8f   : > { %2864 = vmatpush.bf16.msra.mxu0 %v4616_v37  ;;  %v4684_v37 = vld [vmem:[%s5252_s9 + $0x438] sm:$0xff] }
  0x90   : > { %2877 = vmatpush.bf16.msra.mxu1 %v4624_v38  ;;  %v4692_v38 = vld [vmem:[%s5252_s9 + $0x478] sm:$0xff] }
  0x91   : > { %2890 = vmatpush.bf16.msra.mxu2 %v4632_v39  ;;  %v4700_v39 = vld [vmem:[%s5252_s9 + $0x4b8] sm:$0xff] }
  0x92   : > { %2903 = vmatpush.bf16.msra.mxu3 %v4640_v40  ;;  %v4708_v40 = vld [vmem:[%s5252_s9 + $0x4f8] sm:$0xff] }
  0x93   : > { %2865 = vmatpush.bf16.msra.mxu0 %v4615_v41  ;;  %v968_v41 = vpack.c.b16 %v932_v31, %v932_v31 }
  0x94   : > { %2878 = vmatpush.bf16.msra.mxu1 %v4623_v42  ;;  %v970_v42 = vpack.c.b16 %v934_v32, %v934_v32  ;;  %v4713_v32 = vld [vmem:[%s5252_s9 + $0x520] sm:$0xff] }
  0x95   : > { %2891 = vmatpush.bf16.msra.mxu2 %v4631_v43  ;;  %v969_v43 = vpack.c.b16 %v933_v35, %v933_v35  ;;  %v4729_v35 = vld [vmem:[%s5252_s9 + $0x5a0] sm:$0xff] }
  0x96   : > { %2904 = vmatpush.bf16.msra.mxu3 %v4639_v44  ;;  %v971_v44 = vpack.c.b16 %v935_v36, %v935_v36  ;;  %v4737_v36 = vld [vmem:[%s5252_s9 + $0x5e0] sm:$0xff] }
  0x97   : > { %2866 = vmatpush.bf16.msra.mxu0 %v4614_v45  ;;  %v4683_v45 = vld [vmem:[%s5252_s9 + $0x430] sm:$0xff] }
  0x98   : > { %2879 = vmatpush.bf16.msra.mxu1 %v4622_v46  ;;  %v4691_v46 = vld [vmem:[%s5252_s9 + $0x470] sm:$0xff] }
  0x99   : > { %2892 = vmatpush.bf16.msra.mxu2 %v4630_v47  ;;  %v4699_v47 = vld [vmem:[%s5252_s9 + $0x4b0] sm:$0xff] }
  0x9a   : > { %2905 = vmatpush.bf16.msra.mxu3 %v4638_v48  ;;  %v4707_v48 = vld [vmem:[%s5252_s9 + $0x4f0] sm:$0xff] }
  0x9b   : > { %2867 = vmatpush.bf16.msra.mxu0 %v4613_v51  ;;  %v4698_v51 = vld [vmem:[%s5252_s9 + $0x4a8] sm:$0xff] }
  0x9c   : > { %2880 = vmatpush.bf16.msra.mxu1 %v4621_v52  ;;  %v4706_v52 = vld [vmem:[%s5252_s9 + $0x4e8] sm:$0xff] }
  0x9d   : > { %2893 = vmatpush.bf16.msra.mxu2 %v4629_v55  ;;  %v4697_v55 = vld [vmem:[%s5252_s9 + $0x4a0] sm:$0xff] }
  0x9e   : > { %2906 = vmatpush.bf16.msra.mxu3 %v4637_v56  ;;  %2868 = vmatmul.bf16.vlgmr.msra.gmra.mxu0 %v964_v63  ;;  %v4705_v56 = vld [vmem:[%s5252_s9 + $0x4e0] sm:$0xff]  ;;  %v4695_v63 = vld [vmem:[%s5252_s9 + $0x490] sm:$0xff] }
  0x9f   : > { %2912 = vmatpush.bf16.msrb.mxu0 %v4652_v59  ;;  %2881 = vmatmul.bf16.vlgmr.msra.gmra.mxu1 %v965_v1  ;;  %v4696_v59 = vld [vmem:[%s5252_s9 + $0x498] sm:$0xff]  ;;  %v4678_v1 = vld [vmem:[%s5252_s9 + $0x408] sm:$0xff] }
  0xa0   : > { %2925 = vmatpush.bf16.msrb.mxu1 %v4660_v60  ;;  %2894 = vmatmul.bf16.vlgmr.msra.gmra.mxu2 %v966_v0  ;;  %v4704_v60 = vld [vmem:[%s5252_s9 + $0x4d8] sm:$0xff]  ;;  %v4703_v0 = vld [vmem:[%s5252_s9 + $0x4d0] sm:$0xff] }
  0xa1   : > { %2938 = vmatpush.bf16.msrb.mxu2 %v4668_v61  ;;  %2907 = vmatmul.bf16.vlgmr.msra.gmra.mxu3 %v967_v2  ;;  %v4679_v61 = vld [vmem:[%s5252_s9 + $0x410] sm:$0xff]  ;;  %v4686_v2 = vld [vmem:[%s5252_s9 + $0x448] sm:$0xff] }
  0xa2   : > { %2951 = vmatpush.bf16.msrb.mxu3 %v4676_v62  ;;  %v4687_v62 = vld [vmem:[%s5252_s9 + $0x450] sm:$0xff] }
  0xa3   : > { %2913 = vmatpush.bf16.msrb.mxu0 %v4651_v3  ;;  %v4694_v3 = vld [vmem:[%s5252_s9 + $0x488] sm:$0xff] }
  0xa4   : > { %2926 = vmatpush.bf16.msrb.mxu1 %v4659_v4  ;;  %v4702_v4 = vld [vmem:[%s5252_s9 + $0x4c8] sm:$0xff] }
  0xa5   : > { %2939 = vmatpush.bf16.msrb.mxu2 %v4667_v5  ;;  %v316_v5 = vld [vmem:[%s5270_s11 + $0x40] sm:$0xff] }
  0xa6   : > { %2952 = vmatpush.bf16.msrb.mxu3 %v4675_v6  ;;  %v317_v6 = vld [vmem:[%s5270_s11 + $0x48] sm:$0xff] }
  0xa7   : > { %2914 = vmatpush.bf16.msrb.mxu0 %v4650_v7  ;;  %v4677_v7 = vld [vmem:[%s5252_s9 + $0x400] sm:$0xff] }
  0xa8   : > { %2927 = vmatpush.bf16.msrb.mxu1 %v4658_v8  ;;  %v4685_v8 = vld [vmem:[%s5252_s9 + $0x440] sm:$0xff] }
  0xa9   : > { %2940 = vmatpush.bf16.msrb.mxu2 %v4666_v9  ;;  %v936_v9 = vunpack.c.l.b16 %v316_v5 }
  0xaa   : > { %2953 = vmatpush.bf16.msrb.mxu3 %v4674_v10  ;;  %v938_v10 = vunpack.c.l.b16 %v317_v6 }
  0xab   : > { %2915 = vmatpush.bf16.msrb.mxu0 %v4649_v11  ;;  %v4693_v11 = vld [vmem:[%s5252_s9 + $0x480] sm:$0xff] }
  0xac   : > { %2928 = vmatpush.bf16.msrb.mxu1 %v4657_v12  ;;  %v4701_v12 = vld [vmem:[%s5252_s9 + $0x4c0] sm:$0xff] }
  0xad   : > { %2941 = vmatpush.bf16.msrb.mxu2 %v4665_v13  ;;  %v937_v13 = vunpack.c.h.b16 %v316_v5  ;;  %v4756_v5 = vld [vmem:[%s5252_s9 + $0x678] sm:$0xff] }
  0xae   : > { %2954 = vmatpush.bf16.msrb.mxu3 %v4673_v14  ;;  %v939_v14 = vunpack.c.h.b16 %v317_v6  ;;  %v4764_v6 = vld [vmem:[%s5252_s9 + $0x6b8] sm:$0xff] }
  0xaf   : > { %2916 = vmatpush.bf16.msrb.mxu0 %v4648_v15  ;;  %v4716_v15 = vld [vmem:[%s5252_s9 + $0x538] sm:$0xff] }
  0xb0   : > { %2929 = vmatpush.bf16.msrb.mxu1 %v4656_v16  ;;  %v4724_v16 = vld [vmem:[%s5252_s9 + $0x578] sm:$0xff] }
  0xb1   : > { %2942 = vmatpush.bf16.msrb.mxu2 %v4664_v17  ;;  %v4732_v17 = vld [vmem:[%s5252_s9 + $0x5b8] sm:$0xff] }
  0xb2   : > { %2955 = vmatpush.bf16.msrb.mxu3 %v4672_v18  ;;  %v4740_v18 = vld [vmem:[%s5252_s9 + $0x5f8] sm:$0xff] }
  0xb3   : > { %2917 = vmatpush.bf16.msrb.mxu0 %v4647_v19  ;;  %v972_v19 = vpack.c.b16 %v936_v9, %v936_v9 }
  0xb4   : > { %2930 = vmatpush.bf16.msrb.mxu1 %v4655_v20  ;;  %v974_v20 = vpack.c.b16 %v938_v10, %v938_v10 }
  0xb5   : > { %2943 = vmatpush.bf16.msrb.mxu2 %v4663_v21  ;;  %v973_v21 = vpack.c.b16 %v937_v13, %v937_v13  ;;  %v4755_v13 = vld [vmem:[%s5252_s9 + $0x670] sm:$0xff] }
  0xb6   : > { %2956 = vmatpush.bf16.msrb.mxu3 %v4671_v22  ;;  %v975_v22 = vpack.c.b16 %v939_v14, %v939_v14  ;;  %v4763_v14 = vld [vmem:[%s5252_s9 + $0x6b0] sm:$0xff] }
  0xb7   : > { %2918 = vmatpush.bf16.msrb.mxu0 %v4646_v23  ;;  %v4715_v23 = vld [vmem:[%s5252_s9 + $0x530] sm:$0xff] }
  0xb8   : > { %2931 = vmatpush.bf16.msrb.mxu1 %v4654_v24  ;;  %v4723_v24 = vld [vmem:[%s5252_s9 + $0x570] sm:$0xff] }
  0xb9   : > { %2944 = vmatpush.bf16.msrb.mxu2 %v4662_v25  ;;  %v4731_v25 = vld [vmem:[%s5252_s9 + $0x5b0] sm:$0xff] }
  0xba   : > { %2957 = vmatpush.bf16.msrb.mxu3 %v4670_v26  ;;  %v4739_v26 = vld [vmem:[%s5252_s9 + $0x5f0] sm:$0xff] }
  0xbb   : > { %2919 = vmatpush.bf16.msrb.mxu0 %v4645_v29  ;;  %v4730_v29 = vld [vmem:[%s5252_s9 + $0x5a8] sm:$0xff] }
  0xbc   : > { %2932 = vmatpush.bf16.msrb.mxu1 %v4653_v30  ;;  %v4738_v30 = vld [vmem:[%s5252_s9 + $0x5e8] sm:$0xff] }
  0xbd   : > { %2945 = vmatpush.bf16.msrb.mxu2 %v4661_v33  ;;  %v4721_v33 = vld [vmem:[%s5252_s9 + $0x560] sm:$0xff] }
  0xbe   : > { %2958 = vmatpush.bf16.msrb.mxu3 %v4669_v34  ;;  %2920 = vmatmul.bf16.vlgmr.msrb.gmra.mxu0 %v968_v41  ;;  %v4736_v41 = vld [vmem:[%s5252_s9 + $0x5d8] sm:$0xff] }
  0xbf   : > { %2964 = vmatpush.bf16.msra.mxu0 %v4684_v37  ;;  %2933 = vmatmul.bf16.vlgmr.msrb.gmra.mxu1 %v969_v43 }
  0xc0   : > { %2977 = vmatpush.bf16.msra.mxu1 %v4692_v38  ;;  %2946 = vmatmul.bf16.vlgmr.msrb.gmra.mxu2 %v970_v42  ;;  %v4712_v38 = vld [vmem:[%s5252_s9 + $0x518] sm:$0xff] }
  0xc1   : > { %2990 = vmatpush.bf16.msra.mxu2 %v4700_v39  ;;  %2959 = vmatmul.bf16.vlgmr.msrb.gmra.mxu3 %v971_v44  ;;  %v4720_v39 = vld [vmem:[%s5252_s9 + $0x558] sm:$0xff] }
  0xc2   : > { %3003 = vmatpush.bf16.msra.mxu3 %v4708_v40  ;;  %v4728_v40 = vld [vmem:[%s5252_s9 + $0x598] sm:$0xff] }
  0xc3   : > { %2965 = vmatpush.bf16.msra.mxu0 %v4683_v45 }
  0xc4   : > { %2978 = vmatpush.bf16.msra.mxu1 %v4691_v46  ;;  %v4711_v46 = vld [vmem:[%s5252_s9 + $0x510] sm:$0xff] }
  0xc5   : > { %2991 = vmatpush.bf16.msra.mxu2 %v4699_v47  ;;  %v4719_v47 = vld [vmem:[%s5252_s9 + $0x550] sm:$0xff] }
  0xc6   : > { %3004 = vmatpush.bf16.msra.mxu3 %v4707_v48 }
  0xc7   : > { %2966 = vmatpush.bf16.msra.mxu0 %v4682_v49 }
  0xc8   : > { %2979 = vmatpush.bf16.msra.mxu1 %v4690_v50  ;;  %v4727_v50 = vld [vmem:[%s5252_s9 + $0x590] sm:$0xff] }
  0xc9   : > { %2992 = vmatpush.bf16.msra.mxu2 %v4698_v51  ;;  %v4735_v51 = vld [vmem:[%s5252_s9 + $0x5d0] sm:$0xff] }
  0xca   : > { %3005 = vmatpush.bf16.msra.mxu3 %v4706_v52  ;;  %v4710_v52 = vld [vmem:[%s5252_s9 + $0x508] sm:$0xff] }
  0xcb   : > { %2967 = vmatpush.bf16.msra.mxu0 %v4681_v53  ;;  %v4718_v53 = vld [vmem:[%s5252_s9 + $0x548] sm:$0xff] }
  0xcc   : > { %2980 = vmatpush.bf16.msra.mxu1 %v4689_v54  ;;  %v4726_v54 = vld [vmem:[%s5252_s9 + $0x588] sm:$0xff] }
  0xcd   : > { %2993 = vmatpush.bf16.msra.mxu2 %v4697_v55  ;;  %v4734_v55 = vld [vmem:[%s5252_s9 + $0x5c8] sm:$0xff] }
  0xce   : > { %3006 = vmatpush.bf16.msra.mxu3 %v4705_v56  ;;  %v318_v56 = vld [vmem:[%s5270_s11 + $0x50] sm:$0xff] }
  0xcf   : > { %2968 = vmatpush.bf16.msra.mxu0 %v4680_v57  ;;  %v319_v57 = vld [vmem:[%s5270_s11 + $0x58] sm:$0xff] }
  0xd0   : > { %2981 = vmatpush.bf16.msra.mxu1 %v4688_v58 }
  0xd1   : > { %2994 = vmatpush.bf16.msra.mxu2 %v4696_v59 }
  0xd2   : > { %3007 = vmatpush.bf16.msra.mxu3 %v4704_v60  ;;  %v4709_v60 = vld [vmem:[%s5252_s9 + $0x500] sm:$0xff] }
  0xd3   : > { %2969 = vmatpush.bf16.msra.mxu0 %v4679_v61  ;;  %v4717_v61 = vld [vmem:[%s5252_s9 + $0x540] sm:$0xff] }
  0xd4   : > { %2982 = vmatpush.bf16.msra.mxu1 %v4687_v62  ;;  %v940_v62 = vunpack.c.l.b16 %v318_v56 }
  0xd5   : > { %2995 = vmatpush.bf16.msra.mxu2 %v4695_v63  ;;  %v942_v63 = vunpack.c.l.b16 %v319_v57 }
  0xd6   : > { %3008 = vmatpush.bf16.msra.mxu3 %v4703_v0  ;;  %v4725_v0 = vld [vmem:[%s5252_s9 + $0x580] sm:$0xff] }
  0xd7   : > { %2970 = vmatpush.bf16.msra.mxu0 %v4678_v1  ;;  %v4733_v1 = vld [vmem:[%s5252_s9 + $0x5c0] sm:$0xff]  ;;  %v978_v9 = vpack.c.b16 %v942_v63, %v942_v63 }
  0xd8   : > { %2983 = vmatpush.bf16.msra.mxu1 %v4686_v2  ;;  %v941_v2 = vunpack.c.h.b16 %v318_v56 }
  0xd9   : > { %2996 = vmatpush.bf16.msra.mxu2 %v4694_v3  ;;  %v943_v3 = vunpack.c.h.b16 %v319_v57 }
  0xda   : > { %3009 = vmatpush.bf16.msra.mxu3 %v4702_v4  ;;  %v4748_v4 = vld [vmem:[%s5252_s9 + $0x638] sm:$0xff]  ;;  %v977_v10 = vpack.c.b16 %v941_v2, %v941_v2  ;;  %v4779_v2 = vld [vmem:[%s5252_s9 + $0x730] sm:$0xff] }
  0xdb   : > { %2971 = vmatpush.bf16.msra.mxu0 %v4677_v7  ;;  %v2765_v31 = vpop.f32.mrf.mxu0  ;;  %v4772_v7 = vld [vmem:[%s5252_s9 + $0x6f8] sm:$0xff] }
  0xdc   : > { %2984 = vmatpush.bf16.msra.mxu1 %v4685_v8  ;;  %v2778_v34 = vpop.f32.mrf.mxu1  ;;  %v976_v8 = vpack.c.b16 %v940_v62, %v940_v62 }
  0xdd   : > { %2997 = vmatpush.bf16.msra.mxu2 %v4693_v11  ;;  %v2779_v37 = vadd.f32 %v2778_v34, %v2765_v31  ;;  %v979_v11 = vpack.c.b16 %v943_v3, %v943_v3  ;;  %v4768_v31 = vld [vmem:[%s5252_s9 + $0x6d8] sm:$0xff]  ;;  %v4787_v3 = vld [vmem:[%s5252_s9 + $0x770] sm:$0xff] }
  0xde   : > { %3010 = vmatpush.bf16.msra.mxu3 %v4701_v12  ;;  %2972 = vmatmul.bf16.vlgmr.msra.gmra.mxu0 %v972_v19  ;;  %v4747_v12 = vld [vmem:[%s5252_s9 + $0x630] sm:$0xff]  ;;  %v4770_v19 = vld [vmem:[%s5252_s9 + $0x6e8] sm:$0xff] }
  0xdf   : > { %3016 = vmatpush.bf16.msrb.mxu0 %v4716_v15  ;;  %2985 = vmatmul.bf16.vlgmr.msra.gmra.mxu1 %v973_v21  ;;  %v4771_v15 = vld [vmem:[%s5252_s9 + $0x6f0] sm:$0xff]  ;;  %v4745_v21 = vld [vmem:[%s5252_s9 + $0x620] sm:$0xff] }
  0xe0   : > { %3029 = vmatpush.bf16.msrb.mxu1 %v4724_v16  ;;  %2998 = vmatmul.bf16.vlgmr.msra.gmra.mxu2 %v974_v20  ;;  %v4746_v16 = vld [vmem:[%s5252_s9 + $0x628] sm:$0xff] }
  0xe1   : > { %3042 = vmatpush.bf16.msrb.mxu2 %v4732_v17  ;;  %3011 = vmatmul.bf16.vlgmr.msra.gmra.mxu3 %v975_v22  ;;  %v4754_v17 = vld [vmem:[%s5252_s9 + $0x668] sm:$0xff]  ;;  %v4753_v22 = vld [vmem:[%s5252_s9 + $0x660] sm:$0xff] }
  0xe2   : > { %3055 = vmatpush.bf16.msrb.mxu3 %v4740_v18  ;;  %v4762_v18 = vld [vmem:[%s5252_s9 + $0x6a8] sm:$0xff] }
  0xe3   : > { %3017 = vmatpush.bf16.msrb.mxu0 %v4715_v23  ;;  %v2791_v42 = vpop.f32.mrf.mxu2  ;;  %v2767_v45 = vpop.f32.mrf.mxu0 }
  0xe4   : > { %3030 = vmatpush.bf16.msrb.mxu1 %v4723_v24  ;;  %v2792_v43 = vadd.f32 %v2791_v42, %v2779_v37  ;;  %v2804_v44 = vpop.f32.mrf.mxu3  ;;  %v2780_v49 = vpop.f32.mrf.mxu1  ;;  %v4751_v37 = vld [vmem:[%s5252_s9 + $0x650] sm:$0xff]  ;;  %v4742_v42 = vld [vmem:[%s5252_s9 + $0x608] sm:$0xff] }
  0xe5   : > { %3043 = vmatpush.bf16.msrb.mxu2 %v4731_v25  ;;  %v4761_v25 = vld [vmem:[%s5252_s9 + $0x6a0] sm:$0xff]  ;;  %v4766_v45 = vld [vmem:[%s5252_s9 + $0x6c8] sm:$0xff] }
  0xe6   : > { %3056 = vmatpush.bf16.msrb.mxu3 %v4739_v26  ;;  %v5466_v48 = vadd.f32 %v2804_v44, %v2792_v43  ;;  %v4769_v26 = vld [vmem:[%s5252_s9 + $0x6e0] sm:$0xff]  ;;  %v4750_v43 = vld [vmem:[%s5252_s9 + $0x648] sm:$0xff] }
  0xe7   : > { %3018 = vmatpush.bf16.msrb.mxu0 %v4714_v27  ;;  %v4758_v44 = vld [vmem:[%s5252_s9 + $0x688] sm:$0xff] }
  0xe8   : > { %3031 = vmatpush.bf16.msrb.mxu1 %v4722_v28  ;;  %v4744_v28 = vld [vmem:[%s5252_s9 + $0x618] sm:$0xff] }
  0xe9   : > { %3044 = vmatpush.bf16.msrb.mxu2 %v4730_v29  ;;  %v4752_v29 = vld [vmem:[%s5252_s9 + $0x658] sm:$0xff] }
  0xea   : > { %3057 = vmatpush.bf16.msrb.mxu3 %v4738_v30  ;;  %v4760_v30 = vld [vmem:[%s5252_s9 + $0x698] sm:$0xff] }
  0xeb   : > { %3019 = vmatpush.bf16.msrb.mxu0 %v4713_v32  ;;  %v2793_v58 = vpop.f32.mrf.mxu2 }
  0xec   : > { %3032 = vmatpush.bf16.msrb.mxu1 %v4721_v33  ;;  %v2806_v59 = vpop.f32.mrf.mxu3  ;;  %v4780_v58 = vld [vmem:[%s5252_s9 + $0x738] sm:$0xff] }
  0xed   : > { %3045 = vmatpush.bf16.msrb.mxu2 %v4729_v35  ;;  %v4788_v59 = vld [vmem:[%s5252_s9 + $0x778] sm:$0xff] }
  0xee   : > { %3058 = vmatpush.bf16.msrb.mxu3 %v4737_v36  ;;  %v4743_v36 = vld [vmem:[%s5252_s9 + $0x610] sm:$0xff] }
  0xef   : > { %3020 = vmatpush.bf16.msrb.mxu0 %v4712_v38 }
  0xf0   : > { %3033 = vmatpush.bf16.msrb.mxu1 %v4720_v39 }
  0xf1   : > { %3046 = vmatpush.bf16.msrb.mxu2 %v4728_v40  ;;  %v4759_v40 = vld [vmem:[%s5252_s9 + $0x690] sm:$0xff] }
  0xf2   : > { %3059 = vmatpush.bf16.msrb.mxu3 %v4736_v41  ;;  %v4767_v41 = vld [vmem:[%s5252_s9 + $0x6d0] sm:$0xff] }
  0xf3   : > { %3021 = vmatpush.bf16.msrb.mxu0 %v4711_v46  ;;  %v320_v46 = vld [vmem:[%s5270_s11 + $0x60] sm:$0xff] }
  0xf4   : > { %3034 = vmatpush.bf16.msrb.mxu1 %v4719_v47  ;;  %v321_v47 = vld [vmem:[%s5270_s11 + $0x68] sm:$0xff]  ;;  %v945_v56 = vunpack.c.h.b16 %v320_v46 }
  0xf5   : > { %3047 = vmatpush.bf16.msrb.mxu2 %v4727_v50  ;;  %v4741_v50 = vld [vmem:[%s5252_s9 + $0x600] sm:$0xff]  ;;  %v947_v57 = vunpack.c.h.b16 %v321_v47 }
  0xf6   : > { %3060 = vmatpush.bf16.msrb.mxu3 %v4735_v51  ;;  %v4749_v51 = vld [vmem:[%s5252_s9 + $0x640] sm:$0xff] }
  0xf7   : > { %3022 = vmatpush.bf16.msrb.mxu0 %v4710_v52  ;;  %v944_v52 = vunpack.c.l.b16 %v320_v46 }
  0xf8   : > { %3035 = vmatpush.bf16.msrb.mxu1 %v4718_v53  ;;  %v946_v53 = vunpack.c.l.b16 %v321_v47 }
  0xf9   : > { %3048 = vmatpush.bf16.msrb.mxu2 %v4726_v54  ;;  %v4757_v54 = vld [vmem:[%s5252_s9 + $0x680] sm:$0xff]  ;;  %v980_v62 = vpack.c.b16 %v944_v52, %v944_v52 }
  0xfa   : > { %3061 = vmatpush.bf16.msrb.mxu3 %v4734_v55  ;;  %v4765_v55 = vld [vmem:[%s5252_s9 + $0x6c0] sm:$0xff]  ;;  %v982_v63 = vpack.c.b16 %v946_v53, %v946_v53 }
  0xfb   : > { %3023 = vmatpush.bf16.msrb.mxu0 %v4709_v60  ;;  %v2817_v20 = vpop.f32.mrf.mxu0  ;;  %v4796_v60 = vld [vmem:[%s5252_s9 + $0x7b8] sm:$0xff] }
  0xfc   : > { %3036 = vmatpush.bf16.msrb.mxu1 %v4717_v61  ;;  %v2818_v23 = vadd.f32 %v2817_v20, %v5466_v48  ;;  %v2830_v24 = vpop.f32.mrf.mxu1  ;;  %v4804_v61 = vld [vmem:[%s5252_s9 + $0x7f8] sm:$0xff] }
  0xfd   : > { %3049 = vmatpush.bf16.msrb.mxu2 %v4725_v0  ;;  %v981_v0 = vpack.c.b16 %v945_v56, %v945_v56  ;;  %v4792_v20 = vld [vmem:[%s5252_s9 + $0x798] sm:$0xff]  ;;  %v4811_v56 = vld [vmem:[%s5252_s9 + $0x830] sm:$0xff] }
  0xfe   : > { %3062 = vmatpush.bf16.msrb.mxu3 %v4733_v1  ;;  %3024 = vmatmul.bf16.vlgmr.msrb.gmra.mxu0 %v976_v8  ;;  %v2831_v27 = vadd.f32 %v2830_v24, %v2818_v23  ;;  %v983_v1 = vpack.c.b16 %v947_v57, %v947_v57  ;;  %v4794_v8 = vld [vmem:[%s5252_s9 + $0x7a8] sm:$0xff]  ;;  %v4819_v57 = vld [vmem:[%s5252_s9 + $0x870] sm:$0xff] }
  0xff   : > { %3068 = vmatpush.bf16.msra.mxu0 %v4748_v4  ;;  %3037 = vmatmul.bf16.vlgmr.msrb.gmra.mxu1 %v977_v10  ;;  %v4795_v4 = vld [vmem:[%s5252_s9 + $0x7b0] sm:$0xff] }
 0x100   : > { %3081 = vmatpush.bf16.msra.mxu1 %v4756_v5  ;;  %3050 = vmatmul.bf16.vlgmr.msrb.gmra.mxu2 %v978_v9  ;;  %v4803_v5 = vld [vmem:[%s5252_s9 + $0x7f0] sm:$0xff]  ;;  %v4802_v9 = vld [vmem:[%s5252_s9 + $0x7e8] sm:$0xff] }
 0x101   : > { %3094 = vmatpush.bf16.msra.mxu2 %v4764_v6  ;;  %3063 = vmatmul.bf16.vlgmr.msrb.gmra.mxu3 %v979_v11  ;;  %v4778_v6 = vld [vmem:[%s5252_s9 + $0x728] sm:$0xff] }
 0x102   : > { %3107 = vmatpush.bf16.msra.mxu3 %v4772_v7  ;;  %v4786_v7 = vld [vmem:[%s5252_s9 + $0x768] sm:$0xff] }
 0x103   : > { %3069 = vmatpush.bf16.msra.mxu0 %v4747_v12  ;;  %v2843_v32 = vpop.f32.mrf.mxu2  ;;  %v2819_v35 = vpop.f32.mrf.mxu0  ;;  %v4777_v12 = vld [vmem:[%s5252_s9 + $0x720] sm:$0xff] }
 0x104   : > { %3082 = vmatpush.bf16.msra.mxu1 %v4755_v13  ;;  %v2844_v33 = vadd.f32 %v2843_v32, %v2831_v27  ;;  %v2856_v34 = vpop.f32.mrf.mxu3  ;;  %v2832_v39 = vpop.f32.mrf.mxu1  ;;  %v4785_v13 = vld [vmem:[%s5252_s9 + $0x760] sm:$0xff]  ;;  %v4775_v27 = vld [vmem:[%s5252_s9 + $0x710] sm:$0xff]  ;;  %v4774_v32 = vld [vmem:[%s5252_s9 + $0x708] sm:$0xff] }
 0x105   : > { %3095 = vmatpush.bf16.msra.mxu2 %v4763_v14  ;;  %v4798_v35 = vld [vmem:[%s5252_s9 + $0x7c8] sm:$0xff] }
 0x106   : > { %3108 = vmatpush.bf16.msra.mxu3 %v4771_v15  ;;  %v5503_v38 = vadd.f32 %v2856_v34, %v2844_v33  ;;  %v4793_v15 = vld [vmem:[%s5252_s9 + $0x7a0] sm:$0xff]  ;;  %v4782_v33 = vld [vmem:[%s5252_s9 + $0x748] sm:$0xff] }
 0x107   : > { %3070 = vmatpush.bf16.msra.mxu0 %v4746_v16  ;;  %v4801_v16 = vld [vmem:[%s5252_s9 + $0x7e0] sm:$0xff]  ;;  %v4790_v34 = vld [vmem:[%s5252_s9 + $0x788] sm:$0xff] }
 0x108   : > { %3083 = vmatpush.bf16.msra.mxu1 %v4754_v17 }
 0x109   : > { %3096 = vmatpush.bf16.msra.mxu2 %v4762_v18  ;;  %v4776_v18 = vld [vmem:[%s5252_s9 + $0x718] sm:$0xff] }
 0x10a   : > { %3109 = vmatpush.bf16.msra.mxu3 %v4770_v19  ;;  %v4784_v19 = vld [vmem:[%s5252_s9 + $0x758] sm:$0xff] }
 0x10b   : > { %3071 = vmatpush.bf16.msra.mxu0 %v4745_v21  ;;  %v2845_v48 = vpop.f32.mrf.mxu2  ;;  %v4800_v21 = vld [vmem:[%s5252_s9 + $0x7d8] sm:$0xff] }
 0x10c   : > { %3084 = vmatpush.bf16.msra.mxu1 %v4753_v22  ;;  %v2858_v49 = vpop.f32.mrf.mxu3  ;;  %v4812_v48 = vld [vmem:[%s5252_s9 + $0x838] sm:$0xff] }
 0x10d   : > { %3097 = vmatpush.bf16.msra.mxu2 %v4761_v25  ;;  %v4820_v49 = vld [vmem:[%s5252_s9 + $0x878] sm:$0xff] }
 0x10e   : > { %3110 = vmatpush.bf16.msra.mxu3 %v4769_v26 }
 0x10f   : > { %3072 = vmatpush.bf16.msra.mxu0 %v4744_v28  ;;  %v4783_v28 = vld [vmem:[%s5252_s9 + $0x750] sm:$0xff] }
 0x110   : > { %3085 = vmatpush.bf16.msra.mxu1 %v4752_v29 }
 0x111   : > { %3098 = vmatpush.bf16.msra.mxu2 %v4760_v30  ;;  %v4791_v30 = vld [vmem:[%s5252_s9 + $0x790] sm:$0xff] }
 0x112   : > { %3111 = vmatpush.bf16.msra.mxu3 %v4768_v31  ;;  %v4799_v31 = vld [vmem:[%s5252_s9 + $0x7d0] sm:$0xff] }
 0x113   : > { %3073 = vmatpush.bf16.msra.mxu0 %v4743_v36  ;;  %v322_v36 = vld [vmem:[%s5270_s11 + $0x70] sm:$0xff] }
 0x114   : > { %3086 = vmatpush.bf16.msra.mxu1 %v4751_v37  ;;  %v323_v37 = vld [vmem:[%s5270_s11 + $0x78] sm:$0xff]  ;;  %v949_v46 = vunpack.c.h.b16 %v322_v36 }
 0x115   : > { %3099 = vmatpush.bf16.msra.mxu2 %v4759_v40  ;;  %v4773_v40 = vld [vmem:[%s5252_s9 + $0x700] sm:$0xff]  ;;  %v951_v47 = vunpack.c.h.b16 %v323_v37 }
 0x116   : > { %3112 = vmatpush.bf16.msra.mxu3 %v4767_v41  ;;  %v4781_v41 = vld [vmem:[%s5252_s9 + $0x740] sm:$0xff] }
 0x117   : > { %3074 = vmatpush.bf16.msra.mxu0 %v4742_v42  ;;  %v948_v42 = vunpack.c.l.b16 %v322_v36  ;;  %v4821_v36 = vld [vmem:[%s5252_s9 + $0x880] sm:$0xff] }
 0x118   : > { %3087 = vmatpush.bf16.msra.mxu1 %v4750_v43  ;;  %v950_v43 = vunpack.c.l.b16 %v323_v37  ;;  %v4829_v37 = vld [vmem:[%s5252_s9 + $0x8c0] sm:$0xff] }
 0x119   : > { %3100 = vmatpush.bf16.msra.mxu2 %v4758_v44  ;;  %v4789_v44 = vld [vmem:[%s5252_s9 + $0x780] sm:$0xff]  ;;  %v984_v52 = vpack.c.b16 %v948_v42, %v948_v42 }
 0x11a   : > { %3113 = vmatpush.bf16.msra.mxu3 %v4766_v45  ;;  %v4797_v45 = vld [vmem:[%s5252_s9 + $0x7c0] sm:$0xff]  ;;  %v986_v53 = vpack.c.b16 %v950_v43, %v950_v43 }
 0x11b   : > { %3075 = vmatpush.bf16.msra.mxu0 %v4741_v50  ;;  %v2869_v10 = vpop.f32.mrf.mxu0  ;;  %v4828_v50 = vld [vmem:[%s5252_s9 + $0x8b8] sm:$0xff] }
 0x11c   : > { %3088 = vmatpush.bf16.msra.mxu1 %v4749_v51  ;;  %v2870_v11 = vadd.f32 %v2869_v10, %v5503_v38  ;;  %v2882_v14 = vpop.f32.mrf.mxu1  ;;  %v4836_v51 = vld [vmem:[%s5252_s9 + $0x8f8] sm:$0xff] }
 0x11d   : > { %3101 = vmatpush.bf16.msra.mxu2 %v4757_v54  ;;  %v985_v54 = vpack.c.b16 %v949_v46, %v949_v46  ;;  %v4824_v10 = vld [vmem:[%s5252_s9 + $0x898] sm:$0xff] }
 0x11e   : > { %3114 = vmatpush.bf16.msra.mxu3 %v4765_v55  ;;  %3076 = vmatmul.bf16.vlgmr.msra.gmra.mxu0 %v980_v62  ;;  %v2883_v17 = vadd.f32 %v2882_v14, %v2870_v11  ;;  %v987_v55 = vpack.c.b16 %v951_v47, %v951_v47  ;;  %v4826_v62 = vld [vmem:[%s5252_s9 + $0x8a8] sm:$0xff]  ;;  %v4832_v11 = vld [vmem:[%s5252_s9 + $0x8d8] sm:$0xff] }
 0x11f   : > { %3120 = vmatpush.bf16.msrb.mxu0 %v4780_v58  ;;  %3089 = vmatmul.bf16.vlgmr.msra.gmra.mxu1 %v981_v0  ;;  %v4827_v58 = vld [vmem:[%s5252_s9 + $0x8b0] sm:$0xff] }
 0x120   : > { %3133 = vmatpush.bf16.msrb.mxu1 %v4788_v59  ;;  %3102 = vmatmul.bf16.vlgmr.msra.gmra.mxu2 %v982_v63  ;;  %v4835_v59 = vld [vmem:[%s5252_s9 + $0x8f0] sm:$0xff]  ;;  %v4834_v63 = vld [vmem:[%s5252_s9 + $0x8e8] sm:$0xff] }
 0x121   : > { %3146 = vmatpush.bf16.msrb.mxu2 %v4796_v60  ;;  %3115 = vmatmul.bf16.vlgmr.msra.gmra.mxu3 %v983_v1  ;;  %v4810_v60 = vld [vmem:[%s5252_s9 + $0x828] sm:$0xff] }
 0x122   : > { %3159 = vmatpush.bf16.msrb.mxu3 %v4804_v61  ;;  %v4818_v61 = vld [vmem:[%s5252_s9 + $0x868] sm:$0xff] }
 0x123   : > { %3121 = vmatpush.bf16.msrb.mxu0 %v4779_v2  ;;  %v2895_v22 = vpop.f32.mrf.mxu2  ;;  %v2871_v25 = vpop.f32.mrf.mxu0  ;;  %v4809_v2 = vld [vmem:[%s5252_s9 + $0x820] sm:$0xff] }
 0x124   : > { %3134 = vmatpush.bf16.msrb.mxu1 %v4787_v3  ;;  %v2896_v23 = vadd.f32 %v2895_v22, %v2883_v17  ;;  %v2908_v24 = vpop.f32.mrf.mxu3  ;;  %v2884_v29 = vpop.f32.mrf.mxu1  ;;  %v4817_v3 = vld [vmem:[%s5252_s9 + $0x860] sm:$0xff]  ;;  %v4807_v17 = vld [vmem:[%s5252_s9 + $0x810] sm:$0xff]  ;;  %v4806_v22 = vld [vmem:[%s5252_s9 + $0x808] sm:$0xff] }
 0x125   : > { %3147 = vmatpush.bf16.msrb.mxu2 %v4795_v4  ;;  %v4822_v25 = vld [vmem:[%s5252_s9 + $0x888] sm:$0xff] }
 0x126   : > { %3160 = vmatpush.bf16.msrb.mxu3 %v4803_v5  ;;  %v5538_v26 = vadd.f32 %v2908_v24, %v2896_v23  ;;  %v4825_v5 = vld [vmem:[%s5252_s9 + $0x8a0] sm:$0xff]  ;;  %v4814_v23 = vld [vmem:[%s5252_s9 + $0x848] sm:$0xff]  ;;  %v324_v24 = vld [vmem:[%s5270_s11 + $0x80] sm:$0xff] }
 0x127   : > { %3122 = vmatpush.bf16.msrb.mxu0 %v4778_v6  ;;  %v4833_v6 = vld [vmem:[%s5252_s9 + $0x8e0] sm:$0xff] }
 0x128   : > { %3135 = vmatpush.bf16.msrb.mxu1 %v4786_v7 }
 0x129   : > { %3148 = vmatpush.bf16.msrb.mxu2 %v4794_v8  ;;  %v4808_v8 = vld [vmem:[%s5252_s9 + $0x818] sm:$0xff] }
 0x12a   : > { %3161 = vmatpush.bf16.msrb.mxu3 %v4802_v9  ;;  %v4816_v9 = vld [vmem:[%s5252_s9 + $0x858] sm:$0xff] }
 0x12b   : > { %3123 = vmatpush.bf16.msrb.mxu0 %v4777_v12  ;;  %v2897_v38 = vpop.f32.mrf.mxu2 }
 0x12c   : > { %3136 = vmatpush.bf16.msrb.mxu1 %v4785_v13  ;;  %v2910_v39 = vpop.f32.mrf.mxu3 }
 0x12d   : > { %3149 = vmatpush.bf16.msrb.mxu2 %v4793_v15 }
 0x12e   : > { %3162 = vmatpush.bf16.msrb.mxu3 %v4801_v16 }
 0x12f   : > { %3124 = vmatpush.bf16.msrb.mxu0 %v4776_v18  ;;  %v4815_v18 = vld [vmem:[%s5252_s9 + $0x850] sm:$0xff] }
 0x130   : > { %3137 = vmatpush.bf16.msrb.mxu1 %v4784_v19 }
 0x131   : > { %3150 = vmatpush.bf16.msrb.mxu2 %v4792_v20  ;;  %v4823_v20 = vld [vmem:[%s5252_s9 + $0x890] sm:$0xff] }
 0x132   : > { %3163 = vmatpush.bf16.msrb.mxu3 %v4800_v21  ;;  %v4831_v21 = vld [vmem:[%s5252_s9 + $0x8d0] sm:$0xff] }
 0x133   : > { %3125 = vmatpush.bf16.msrb.mxu0 %v4775_v27  ;;  %v325_v27 = vld [vmem:[%s5270_s11 + $0x88] sm:$0xff] }
 0x134   : > { %3138 = vmatpush.bf16.msrb.mxu1 %v4783_v28 }
 0x135   : > { %3151 = vmatpush.bf16.msrb.mxu2 %v4791_v30  ;;  %v952_v30 = vunpack.c.l.b16 %v324_v24 }
 0x136   : > { %3164 = vmatpush.bf16.msrb.mxu3 %v4799_v31  ;;  %v953_v31 = vunpack.c.h.b16 %v324_v24 }
 0x137   : > { %3126 = vmatpush.bf16.msrb.mxu0 %v4774_v32  ;;  %v4805_v32 = vld [vmem:[%s5252_s9 + $0x800] sm:$0xff]  ;;  %v988_v38 = vpack.c.b16 %v952_v30, %v952_v30 }
 0x138   : > { %3139 = vmatpush.bf16.msrb.mxu1 %v4782_v33  ;;  %v4813_v33 = vld [vmem:[%s5252_s9 + $0x840] sm:$0xff]  ;;  %v989_v39 = vpack.c.b16 %v953_v31, %v953_v31 }
 0x139   : > { %3152 = vmatpush.bf16.msrb.mxu2 %v4790_v34  ;;  %v954_v34 = vunpack.c.l.b16 %v325_v27 }
 0x13a   : > { %3165 = vmatpush.bf16.msrb.mxu3 %v4798_v35  ;;  %v955_v35 = vunpack.c.h.b16 %v325_v27 }
 0x13b   : > { %3127 = vmatpush.bf16.msrb.mxu0 %v4773_v40  ;;  %v2921_v0 = vpop.f32.mrf.mxu0  ;;  %v990_v40 = vpack.c.b16 %v954_v34, %v954_v34 }
 0x13c   : > { %3140 = vmatpush.bf16.msrb.mxu1 %v4781_v41  ;;  %v2922_v1 = vadd.f32 %v2921_v0, %v5538_v26  ;;  %v2934_v4 = vpop.f32.mrf.mxu1  ;;  %v4830_v26 = vld [vmem:[%s5252_s9 + $0x8c8] sm:$0xff]  ;;  %v991_v41 = vpack.c.b16 %v955_v35, %v955_v35  ;;  %v307_v35 = vld [vmem:[#allocation2] sm:$0xff] }
 0x13d   : > { %3153 = vmatpush.bf16.msrb.mxu2 %v4789_v44 }
 0x13e   : > { %3166 = vmatpush.bf16.msrb.mxu3 %v4797_v45  ;;  %3128 = vmatmul.bf16.vlgmr.msrb.gmra.mxu0 %v984_v52  ;;  %v2935_v7 = vadd.f32 %v2934_v4, %v2922_v1 }
 0x13f   : > { %3172 = vmatpush.bf16.msra.mxu0 %v4812_v48  ;;  %3141 = vmatmul.bf16.vlgmr.msrb.gmra.mxu1 %v985_v54 }
 0x140   : > { %3185 = vmatpush.bf16.msra.mxu1 %v4820_v49  ;;  %3154 = vmatmul.bf16.vlgmr.msrb.gmra.mxu2 %v986_v53 }
 0x141   : > { %3198 = vmatpush.bf16.msra.mxu2 %v4828_v50  ;;  %3167 = vmatmul.bf16.vlgmr.msrb.gmra.mxu3 %v987_v55 }
 0x142   : > { %3211 = vmatpush.bf16.msra.mxu3 %v4836_v51 }
 0x143   : > { %3173 = vmatpush.bf16.msra.mxu0 %v4811_v56  ;;  %v2947_v12 = vpop.f32.mrf.mxu2  ;;  %v2923_v15 = vpop.f32.mrf.mxu0 }
 0x144   : > { %3186 = vmatpush.bf16.msra.mxu1 %v4819_v57  ;;  %v2948_v13 = vadd.f32 %v2947_v12, %v2935_v7  ;;  %v2960_v14 = vpop.f32.mrf.mxu3  ;;  %v2936_v19 = vpop.f32.mrf.mxu1 }
 0x145   : > { %3199 = vmatpush.bf16.msra.mxu2 %v4827_v58 }
 0x146   : > { %3212 = vmatpush.bf16.msra.mxu3 %v4835_v59  ;;  %v2961_v16 = vadd.f32 %v2960_v14, %v2948_v13 }
 0x147   : > { %3174 = vmatpush.bf16.msra.mxu0 %v4810_v60 }
 0x148   : > { %3187 = vmatpush.bf16.msra.mxu1 %v4818_v61 }
 0x149   : > { %3200 = vmatpush.bf16.msra.mxu2 %v4826_v62 }
 0x14a   : > { %3213 = vmatpush.bf16.msra.mxu3 %v4834_v63 }
 0x14b   : > { %3175 = vmatpush.bf16.msra.mxu0 %v4809_v2  ;;  %v2949_v28 = vpop.f32.mrf.mxu2 }
 0x14c   : > { %3188 = vmatpush.bf16.msra.mxu1 %v4817_v3  ;;  %v2962_v29 = vpop.f32.mrf.mxu3 }
 0x14d   : > { %3201 = vmatpush.bf16.msra.mxu2 %v4825_v5 }
 0x14e   : > { %3214 = vmatpush.bf16.msra.mxu3 %v4833_v6 }
 0x14f   : > { %3176 = vmatpush.bf16.msra.mxu0 %v4808_v8 }
 0x150   : > { %3189 = vmatpush.bf16.msra.mxu1 %v4816_v9 }
 0x151   : > { %3202 = vmatpush.bf16.msra.mxu2 %v4824_v10 }
 0x152   : > { %3215 = vmatpush.bf16.msra.mxu3 %v4832_v11 }
 0x153   : > { %3177 = vmatpush.bf16.msra.mxu0 %v4807_v17 }
 0x154   : > { %3190 = vmatpush.bf16.msra.mxu1 %v4815_v18 }
 0x155   : > { %3203 = vmatpush.bf16.msra.mxu2 %v4823_v20 }
 0x156   : > { %3216 = vmatpush.bf16.msra.mxu3 %v4831_v21 }
 0x157   : > { %3178 = vmatpush.bf16.msra.mxu0 %v4806_v22 }
 0x158   : > { %3191 = vmatpush.bf16.msra.mxu1 %v4814_v23 }
 0x159   : > { %3204 = vmatpush.bf16.msra.mxu2 %v4822_v25 }
 0x15a   : > { %3217 = vmatpush.bf16.msra.mxu3 %v4830_v26 }
 0x15b   : > { %3179 = vmatpush.bf16.msra.mxu0 %v4805_v32  ;;  %v2973_v42 = vpop.f32.mrf.mxu0 }
 0x15c   : > { %3192 = vmatpush.bf16.msra.mxu1 %v4813_v33  ;;  %v2974_v43 = vadd.f32 %v2973_v42, %v2961_v16  ;;  %v2986_v44 = vpop.f32.mrf.mxu1 }
 0x15d   : > { %3205 = vmatpush.bf16.msra.mxu2 %v4821_v36 }
 0x15e   : > { %3218 = vmatpush.bf16.msra.mxu3 %v4829_v37  ;;  %3180 = vmatmul.bf16.vlgmr.msra.gmra.mxu0 %v988_v38  ;;  %v2987_v45 = vadd.f32 %v2986_v44, %v2974_v43 }
 0x15f   : > { %3193 = vmatmul.bf16.vlgmr.msra.gmra.mxu1 %v989_v39 }
 0x160   : > { %3206 = vmatmul.bf16.vlgmr.msra.gmra.mxu2 %v990_v40 }
 0x161   : > { %3219 = vmatmul.bf16.vlgmr.msra.gmra.mxu3 %v991_v41 }
 0x163   : > { %v2999_v46 = vpop.f32.mrf.mxu2  ;;  %v2975_v49 = vpop.f32.mrf.mxu0 }
 0x164   : > { %v3000_v47 = vadd.f32 %v2999_v46, %v2987_v45  ;;  %v3012_v48 = vpop.f32.mrf.mxu3  ;;  %v2988_v51 = vpop.f32.mrf.mxu1 }
 0x166   : > { %v3013_v50 = vadd.f32 %v3012_v48, %v3000_v47 }
 0x16b   : > { %v3001_v52 = vpop.f32.mrf.mxu2 }
 0x16c   : > { %v3014_v53 = vpop.f32.mrf.mxu3 }
 0x17b   : > { %v3025_v54 = vpop.f32.mrf.mxu0 }
 0x17c   : > { %v3026_v55 = vadd.f32 %v3025_v54, %v3013_v50  ;;  %v3038_v56 = vpop.f32.mrf.mxu1 }
 0x17e   : > { %v3039_v57 = vadd.f32 %v3038_v56, %v3026_v55 }
 0x183   : > { %v3051_v58 = vpop.f32.mrf.mxu2  ;;  %v3027_v61 = vpop.f32.mrf.mxu0 }
 0x184   : > { %v3052_v59 = vadd.f32 %v3051_v58, %v3039_v57  ;;  %v3064_v60 = vpop.f32.mrf.mxu3  ;;  %v3040_v63 = vpop.f32.mrf.mxu1 }
 0x186   : > { %v3065_v62 = vadd.f32 %v3064_v60, %v3052_v59 }
 0x18b   : > { %v3053_v0 = vpop.f32.mrf.mxu2 }
 0x18c   : > { %v3066_v1 = vpop.f32.mrf.mxu3 }
 0x19b   : > { %v3077_v2 = vpop.f32.mrf.mxu0 }
 0x19c   : > { %v3090_v3 = vpop.f32.mrf.mxu1  ;;  %v3078_v13 = vadd.f32 %v3077_v2, %v3065_v62 }
 0x19e   : > { %v3091_v17 = vadd.f32 %v3090_v3, %v3078_v13 }
 0x1a3   : > { %v3103_v4 = vpop.f32.mrf.mxu2  ;;  %v3079_v6 = vpop.f32.mrf.mxu0 }
 0x1a4   : > { %v3116_v5 = vpop.f32.mrf.mxu3  ;;  %v3092_v7 = vpop.f32.mrf.mxu1  ;;  %v3104_v18 = vadd.f32 %v3103_v4, %v3091_v17 }
 0x1a6   : > { %v3117_v21 = vadd.f32 %v3116_v5, %v3104_v18 }
 0x1ab   : > { %v3105_v8 = vpop.f32.mrf.mxu2 }
 0x1ac   : > { %v3118_v9 = vpop.f32.mrf.mxu3 }
 0x1bb   : > { %v3129_v10 = vpop.f32.mrf.mxu0 }
 0x1bc   : > { %v3142_v11 = vpop.f32.mrf.mxu1  ;;  %v3130_v22 = vadd.f32 %v3129_v10, %v3117_v21 }
 0x1be   : > { %v3143_v23 = vadd.f32 %v3142_v11, %v3130_v22 }
 0x1c3   : > { %v3155_v12 = vpop.f32.mrf.mxu2  ;;  %v3131_v15 = vpop.f32.mrf.mxu0 }
 0x1c4   : > { %v3168_v14 = vpop.f32.mrf.mxu3  ;;  %v3144_v16 = vpop.f32.mrf.mxu1  ;;  %v3156_v24 = vadd.f32 %v3155_v12, %v3143_v23 }
 0x1c6   : > { %v3169_v25 = vadd.f32 %v3168_v14, %v3156_v24 }
 0x1cb   : > { %v3157_v19 = vpop.f32.mrf.mxu2 }
 0x1cc   : > { %v3170_v20 = vpop.f32.mrf.mxu3 }
 0x1db   : > { %v3181_v26 = vpop.f32.mrf.mxu0 }
 0x1dc   : > { %v3194_v27 = vpop.f32.mrf.mxu1  ;;  %v3182_v28 = vadd.f32 %v3181_v26, %v3169_v25 }
 0x1de   : > { %v3195_v29 = vadd.f32 %v3194_v27, %v3182_v28 }
 0x1e3   : > { %v3207_v30 = vpop.f32.mrf.mxu2  ;;  %v3183_v33 = vpop.f32.mrf.mxu0 }
 0x1e4   : > { %v3220_v31 = vpop.f32.mrf.mxu3  ;;  %v3208_v32 = vadd.f32 %v3207_v30, %v3195_v29  ;;  %v3196_v34 = vpop.f32.mrf.mxu1 }
 0x1e6   : > { %v3221_v36 = vadd.f32 %v3220_v31, %v3208_v32 }
 0x1e8   : > { %v3224_v37 = vadd.f32 %v3221_v36, %v307_v35  ;;  %3229 = sbr.rel (%p4543_p1) target bundleno = 654 (0x28e), region = 64 }
 0x1ea   : > { %3225 = vst [vmem:[#allocation2] sm:$0xff] %v3224_v37 }
 0x1eb   : > { %v3209_v38 = vpop.f32.mrf.mxu2 }
 0x1ec   : > { %v3222_v39 = vpop.f32.mrf.mxu3 }
 0x1ed   : > { %v3252_v40 = vld [vmem:[#allocation8 + $0x78] sm:$0xff]  ;;  %v3251_v41 = vld [vmem:[#allocation8 + $0x70] sm:$0xff]  ;;  %v3250_v42 = vld [vmem:[#allocation8 + $0x68] sm:$0xff] }
 0x1ee   : > { %3257 = vmatpush.msra.mxu0 %v3252_v40  ;;  %v3249_v43 = vld [vmem:[#allocation8 + $0x60] sm:$0xff]  ;;  %v3248_v44 = vld [vmem:[#allocation8 + $0x58] sm:$0xff]  ;;  %v3247_v45 = vld [vmem:[#allocation8 + $0x50] sm:$0xff] }
 0x1ef   : > { %v3246_v46 = vld [vmem:[#allocation8 + $0x48] sm:$0xff]  ;;  %v3245_v47 = vld [vmem:[#allocation8 + $0x40] sm:$0xff]  ;;  %v3244_v48 = vld [vmem:[#allocation8 + $0x38] sm:$0xff] }
 0x1f0   : > { %3258 = vmatpush.msra.mxu0 %v3251_v41  ;;  %v3243_v49 = vld [vmem:[#allocation8 + $0x30] sm:$0xff]  ;;  %v3242_v50 = vld [vmem:[#allocation8 + $0x28] sm:$0xff]  ;;  %v3241_v51 = vld [vmem:[#allocation8 + $0x20] sm:$0xff] }
 0x1f1   : > { %v4921_v52 = vld [vmem:[#allocation6] ss:$0 sm:$0xff]  ;;  %v3230_v53 = vld [vmem:[#allocation2] sm:$0xff]  ;;  %v3238_v57 = vld [vmem:[#allocation8 + $0x8] sm:$0xff] }
 0x1f2   : > { %3259 = vmatpush.msra.mxu0 %v3250_v42  ;;  %v3240_v54 = vld [vmem:[#allocation8 + $0x18] sm:$0xff]  ;;  %v3239_v55 = vld [vmem:[#allocation8 + $0x10] sm:$0xff]  ;;  %v3235_v56 = vadd.f32 %v4921_v52, %v3230_v53  ;;  %v3237_v58 = vld [vmem:[#allocation8] sm:$0xff] }
 0x1f3   : > { %v4922_v60 = vld [vmem:[#allocation9] ss:$0 sm:$0xff] }
 0x1f4   : > { %3260 = vmatpush.msra.mxu0 %v3249_v43  ;;  %v3236_v59 = vmax.f32 %v3235_v56, 0.0 }
 0x1f6   : > { %3261 = vmatpush.msra.mxu0 %v3248_v44 }
 0x1f8   : > { %3262 = vmatpush.msra.mxu0 %v3247_v45 }
 0x1fa   : > { %3263 = vmatpush.msra.mxu0 %v3246_v46 }
 0x1fc   : > { %3264 = vmatpush.msra.mxu0 %v3245_v47 }
 0x1fe   : > { %3265 = vmatpush.msra.mxu0 %v3244_v48 }
 0x200   : > { %3266 = vmatpush.msra.mxu0 %v3243_v49 }
 0x202   : > { %3267 = vmatpush.msra.mxu0 %v3242_v50 }
 0x204   : > { %3268 = vmatpush.msra.mxu0 %v3241_v51 }
 0x206   : > { %3269 = vmatpush.msra.mxu0 %v3240_v54 }
 0x208   : > { %3270 = vmatpush.msra.mxu0 %v3239_v55 }
 0x20a   : > { %3271 = vmatpush.msra.mxu0 %v3238_v57 }
 0x20c   : > { %3272 = vmatpush.msra.mxu0 %v3237_v58 }
 0x20d   : > { %3273 = vmatmul.f32.vlgmr.msra.gmra.mxu0 %v3236_v59 }
 0x28a   : > { %v3274_v61 = vpop.f32.mrf.mxu0 }
 0x28b   : > { %v3275_v62 = vadd.f32 %v4922_v60, %v3274_v61 }
 0x28d   : > { %3277 = vst [vmem:[#allocation11] sm:$0xff] %v3275_v62 }
 0x28e PF: > { %p4878_p4 = scmp.eq.s32.totalorder %s5177_s22, 1  ;;  %s5127_s12 = smov [#allocation11]  }
 0x28f   : > { %s3284_s13 = sshll.u32 %s5127_s12, 4  ;;  %s3286_s21 = sshll.u32 %s5612_s5, 4  ;;  %s3285_s13 = int_to_ptr.vmem [resolvable:$true] %s3284_s13  ;;  %s3287_s21 = int_to_ptr.hbm [resolvable:$true] %s3286_s21 }
 0x290   : > { %4854 = dma.vmem_to_hbm [thread:$0]  (%p4878_p4), %s3285_s13, 128, %s3287_s21, [#allocation5]  }
 0x291   : > { %5100 = dma.done.wait (%p4878_p4), [#allocation5], 128  }
 0x292   : > { %5102 = vsyncadd (%p4878_p4), [#allocation5], 4294967168 }
 0x293 PF: > { %s5617_s16 = smov %s5218_s18  ;;  %p18_p5 = scmp.ge.s32.totalorder %s5218_s18, 4  }
 0x294   : > { %s5618_s18 = smov %s5109_s19  ;;  %s5619_s19 = smov %s5113_s20 }
 0x295   : > { %s5620_s20 = smov %s5228_s26  ;;  %s5621_s21 = smov %s5617_s16 }
 0x296   :  { %20 = sbr.rel (!%p18_p5) target bundleno = 6 (0x6), region = 100 }
 0x29b   :  { %3300 = vsyncpa [#allocation4], 1 }
 0x29c   :  { %3302 = vsyncpa [#allocation4 + $0x1], 1 }
 0x29d   :  { %3303 = vsyncpa [#allocation7], 1 }
 0x29e   :  { %3304 = vsyncpa [#allocation10], 1 }
 0x29f   :  { %3305 = vsyncpa [#allocation5], 1 }
 0x2a0   :  { %3307 = vsyncpa [#allocation5 + $0x1], 1 }

</bundles_post_ra>
